<compile_context>
chip_gen: v5e
topology: v5e:2x2
jax: 0.10.0
libtpu: 0.0.40
codegen_flags: <defaults>
</compile_context>

<pallas_src>
import jax
import jax.numpy as jnp
from jax.experimental import pallas as pl
from jax.experimental.pallas import tpu as pltpu


# ----------------------------------------------------------------------------
# Fused encoder kernel factory.
# Gate order (PyTorch nn.LSTM): i, f, g, o. Bias = b_ih + b_hh (pre-summed).
# ----------------------------------------------------------------------------
def _make_encoder_kernel(num_layers, B, T, D, H, L):
    """Ref order: x_tm, (w_ih, w_hh, b) * num_layers, w_head, b_head, eps_tm,
    z_tm (output), hid (VMEM scratch)."""

    def _cell(gates, c_prev):
        i_g = jax.nn.sigmoid(gates[:, 0 * H:1 * H])
        f_g = jax.nn.sigmoid(gates[:, 1 * H:2 * H])
        g_g = jnp.tanh(gates[:, 2 * H:3 * H])
        o_g = jax.nn.sigmoid(gates[:, 3 * H:4 * H])
        c_new = f_g * c_prev + i_g * g_g
        h_new = o_g * jnp.tanh(c_new)
        return h_new, c_new

    def kernel(*refs):
        x_ref = refs[0]
        layer_refs = [(refs[1 + 3 * l], refs[2 + 3 * l], refs[3 + 3 * l])
                      for l in range(num_layers)]
        whead_ref = refs[1 + 3 * num_layers]
        bhead_ref = refs[2 + 3 * num_layers]
        eps_ref = refs[3 + 3 * num_layers]
        z_ref = refs[4 + 3 * num_layers]
        hid_ref = refs[5 + 3 * num_layers]

        # Hoisted layer-0 input projection (+bias) for all timesteps at once:
        # (T*B, D) x (D, 4H) -> (T*B, 4H). Removes one matmul per timestep
        # from the serial recurrence.
        w_ih0, w_hh0, b0 = layer_refs[0]
        xp0 = (jnp.dot(x_ref[...], w_ih0[...],
                       preferred_element_type=jnp.float32) + b0[...])

        h = [jnp.zeros((B, H), jnp.float32) for _ in range(num_layers)]
        c = [jnp.zeros((B, H), jnp.float32) for _ in range(num_layers)]

        # T is small & static: fully unrolled time loop, state kept in vregs.
        for t in range(T):
            gates = xp0[t * B:(t + 1) * B, :] + jnp.dot(
                h[0], w_hh0[...], preferred_element_type=jnp.float32)
            h[0], c[0] = _cell(gates, c[0])
            for l in range(1, num_layers):
                w_ih, w_hh, b = layer_refs[l]
                gates = (jnp.dot(h[l - 1], w_ih[...],
                                 preferred_element_type=jnp.float32)
                         + jnp.dot(h[l], w_hh[...],
                                   preferred_element_type=jnp.float32)
                         + b[...])
                h[l], c[l] = _cell(gates, c[l])
            # Time-major flat layout: row t*B + b.
            hid_ref[t * B:(t + 1) * B, :] = h[num_layers - 1]

        # Fused VAE head over the whole (T*B, H) hidden slab.
        # w_head = [W_mu | W_logvar] -> one matmul for both heads.
        hidden = hid_ref[...]
        mu_lv = (jnp.dot(hidden, whead_ref[...],
                         preferred_element_type=jnp.float32) + bhead_ref[...])
        mu = mu_lv[:, :L]
        logvar = mu_lv[:, L:]
        z_ref[...] = mu + jnp.exp(logvar * 0.5) * eps_ref[...]

    return kernel


def _encoder_pallas(x_tm, lstm_flat, w_head, b_head, eps_tm,
                    *, num_layers, B, T, D, H, L):
    kernel = _make_encoder_kernel(num_layers, B, T, D, H, L)

    # Advisory cost estimate (real FLOPs / bytes of this tiny custom call).
    flops = 2 * T * B * D * 4 * H                       # hoisted input proj
    flops += num_layers * T * 2 * B * H * 4 * H         # recurrent matmuls
    flops += (num_layers - 1) * T * 2 * B * H * 4 * H   # upper-layer inputs
    flops += 2 * T * B * H * 2 * L                      # fused head matmul
    flops += num_layers * T * B * H * 10 + T * B * L * 3  # elementwise approx
    transcendentals = num_layers * T * B * H * 5 + T * B * L
    args = [x_tm] + list(lstm_flat) + [w_head, b_head, eps_tm]
    bytes_accessed = int(sum(a.size * a.dtype.itemsize for a in args)
                         + T * B * L * 4)

    return pl.pallas_call(
        kernel,
        out_shape=jax.ShapeDtypeStruct((T * B, L), jnp.float32),
        scratch_shapes=[pltpu.VMEM((T * B, H), jnp.float32)],
        cost_estimate=pl.CostEstimate(flops=flops,
                                      transcendentals=transcendentals,
                                      bytes_accessed=bytes_accessed),
    )(*args)


# ----------------------------------------------------------------------------
# Parameters + forward pass (glue in plain JAX; all transforms are on <2 KiB
# tensors — the bulk of the work is the single fused pallas_call).
# ----------------------------------------------------------------------------
def init_encoder_params(key, lstm_layers, rnn_hidden_size, latent_size,
                        input_size):
    H, L, D = rnn_hidden_size, latent_size, input_size
    params = {"lstm": []}
    scale = 1.0 / jnp.sqrt(jnp.asarray(H, jnp.float32))
    for layer in range(lstm_layers):
        d_in = D if layer == 0 else H
        key, k1, k2, k3, k4 = jax.random.split(key, 5)
        w_ih = jax.random.uniform(k1, (d_in, 4 * H), jnp.float32, -scale, scale)
        w_hh = jax.random.uniform(k2, (H, 4 * H), jnp.float32, -scale, scale)
        b_ih = jax.random.uniform(k3, (4 * H,), jnp.float32, -scale, scale)
        b_hh = jax.random.uniform(k4, (4 * H,), jnp.float32, -scale, scale)
        params["lstm"].append({"w_ih": w_ih, "w_hh": w_hh,
                               "b": (b_ih + b_hh).reshape(1, 4 * H)})
    key, k1, k2, k3, k4 = jax.random.split(key, 5)
    params["w_mu"] = jax.random.uniform(k1, (H, L), jnp.float32, -scale, scale)
    params["b_mu"] = jax.random.uniform(k2, (1, L), jnp.float32, -scale, scale)
    params["w_lv"] = jax.random.uniform(k3, (H, L), jnp.float32, -scale, scale)
    params["b_lv"] = jax.random.uniform(k4, (1, L), jnp.float32, -scale, scale)
    return params


@jax.jit
def encoder_forward(params, x, eps):
    """x: (B, T, D) batch_first; eps: (B*T, L) standard-normal noise.
    Returns z: (B, T, L) — matches `z.view(batch_size, window_size, -1)`."""
    B, T, D = x.shape
    num_layers = len(params["lstm"])
    H = params["lstm"][0]["w_hh"].shape[0]
    L = params["w_mu"].shape[1]

    # Tiny (KiB-scale) layout prep: time-major flatten of x and eps so every
    # in-kernel slice is a static contiguous 2D block.
    x_tm = jnp.transpose(x.astype(jnp.float32), (1, 0, 2)).reshape(T * B, D)
    eps_tm = jnp.transpose(eps.reshape(B, T, L), (1, 0, 2)).reshape(T * B, L)

    lstm_flat = []
    for lp in params["lstm"]:
        lstm_flat += [lp["w_ih"], lp["w_hh"], lp["b"]]
    w_head = jnp.concatenate([params["w_mu"], params["w_lv"]], axis=1)  # (H,2L)
    b_head = jnp.concatenate([params["b_mu"], params["b_lv"]], axis=1)  # (1,2L)

    z_tm = _encoder_pallas(x_tm, lstm_flat, w_head, b_head, eps_tm,
                           num_layers=num_layers, B=B, T=T, D=D, H=H, L=L)
    return jnp.transpose(z_tm.reshape(T, B, L), (1, 0, 2))


# ----------------------------------------------------------------------------
# Pure-JAX reference (mirrors the PyTorch module) for a correctness check.
# ----------------------------------------------------------------------------
def _encoder_reference(params, x, eps):
    B, T, _ = x.shape
    h_seq = x.astype(jnp.float32)
    for lp in params["lstm"]:
        w_ih, w_hh, b = lp["w_ih"], lp["w_hh"], lp["b"]
        H = w_hh.shape[0]

        def step(carry, x_t, w_ih=w_ih, w_hh=w_hh, b=b, H=H):
            h_prev, c_prev = carry
            g = x_t @ w_ih + h_prev @ w_hh + b
            i = jax.nn.sigmoid(g[:, :H])
            f = jax.nn.sigmoid(g[:, H:2 * H])
            gg = jnp.tanh(g[:, 2 * H:3 * H])
            o = jax.nn.sigmoid(g[:, 3 * H:])
            c_new = f * c_prev + i * gg
            h_new = o * jnp.tanh(c_new)
            return (h_new, c_new), h_new

        xs = jnp.transpose(h_seq, (1, 0, 2))
        _, ys = jax.lax.scan(step, (jnp.zeros((B, H), jnp.float32),
                                    jnp.zeros((B, H), jnp.float32)), xs)
        h_seq = jnp.transpose(ys, (1, 0, 2))
    hidden = h_seq.reshape(B * T, -1)
    mu = hidden @ params["w_mu"] + params["b_mu"]
    logvar = hidden @ params["w_lv"] + params["b_lv"]
    z = mu + jnp.exp(logvar * 0.5) * eps
    return z.reshape(B, T, -1)


if __name__ == "__main__":
    batch = 2
    window_size = 8      # T
    lstm_layers = 2
    rnn_hidden_size = 32
    latent_size = 16
    input_size = 4

    key = jax.random.PRNGKey(0)
    kp, kx, ke = jax.random.split(key, 3)

    params = init_encoder_params(kp, lstm_layers, rnn_hidden_size,
                                 latent_size, input_size)
    x = jax.random.normal(kx, (batch, window_size, input_size), jnp.float32)
    # torch.randn(mu.shape) equivalent: deterministic standard-normal noise.
    eps = jax.random.normal(ke, (batch * window_size, latent_size), jnp.float32)

    z = encoder_forward(params, x, eps)
    z = jax.block_until_ready(z)
    assert z.shape == (batch, window_size, latent_size)

    z_ref = _encoder_reference(params, x, eps)
    max_err = float(jnp.max(jnp.abs(z - z_ref)))
    assert jnp.allclose(z, z_ref, atol=1e-3, rtol=1e-3), max_err
    print("KERNEL_OK")
</pallas_src>

<mosaic_0001>
module attributes {stable_mosaic.version = 11 : i64} {
  func.func @kernel(%arg0: memref<16x4xf32, #tpu.memory_space<vmem>>, %arg1: memref<4x128xf32, #tpu.memory_space<vmem>>, %arg2: memref<32x128xf32, #tpu.memory_space<vmem>>, %arg3: memref<1x128xf32, #tpu.memory_space<vmem>>, %arg4: memref<32x128xf32, #tpu.memory_space<vmem>>, %arg5: memref<32x128xf32, #tpu.memory_space<vmem>>, %arg6: memref<1x128xf32, #tpu.memory_space<vmem>>, %arg7: memref<32x32xf32, #tpu.memory_space<vmem>>, %arg8: memref<1x32xf32, #tpu.memory_space<vmem>>, %arg9: memref<16x16xf32, #tpu.memory_space<vmem>>, %arg10: memref<16x16xf32, #tpu.memory_space<vmem>>, %arg11: memref<16x32xf32, #tpu.memory_space<vmem>>) attributes {dimension_semantics = [], scalar_prefetch = 0 : i64, scratch_operands = 1 : i64, tpu.core_type = #tpu.core_type<tc>} {
    %c0 = arith.constant 0 : index
    %c0_0 = arith.constant 0 : index
    %0 = vector.load %arg0[%c0, %c0_0] : memref<16x4xf32, #tpu.memory_space<vmem>>, vector<16x4xf32>
    %c0_1 = arith.constant 0 : index
    %c0_2 = arith.constant 0 : index
    %1 = vector.load %arg1[%c0_1, %c0_2] : memref<4x128xf32, #tpu.memory_space<vmem>>, vector<4x128xf32>
    %cst = arith.constant dense<0.000000e+00> : vector<16x128xf32>
    %2 = tpu.matmul %0, %1, %cst {dimension_numbers = #tpu.dot_dimension_numbers<[1], [0], [0], [1], [0, 0, 1, 1], [], []>} : vector<16x4xf32>, vector<4x128xf32>, vector<16x128xf32> -> vector<16x128xf32>
    %c0_3 = arith.constant 0 : index
    %c0_4 = arith.constant 0 : index
    %3 = vector.load %arg3[%c0_3, %c0_4] : memref<1x128xf32, #tpu.memory_space<vmem>>, vector<1x128xf32>
    %4 = vector.broadcast %3 : vector<1x128xf32> to vector<16x128xf32>
    %5 = arith.addf %2, %4 : vector<16x128xf32>
    %cst_5 = arith.constant 0.000000e+00 : f32
    %6 = vector.broadcast %cst_5 : f32 to vector<2x32xf32>
    %cst_6 = arith.constant 0.000000e+00 : f32
    %7 = vector.broadcast %cst_6 : f32 to vector<2x32xf32>
    %cst_7 = arith.constant 0.000000e+00 : f32
    %8 = vector.broadcast %cst_7 : f32 to vector<2x32xf32>
    %cst_8 = arith.constant 0.000000e+00 : f32
    %9 = vector.broadcast %cst_8 : f32 to vector<2x32xf32>
    %10 = vector.extract_strided_slice %5 {offsets = [0, 0], sizes = [2, 128], strides = [1, 1]} : vector<16x128xf32> to vector<2x128xf32>
    %c0_9 = arith.constant 0 : index
    %c0_10 = arith.constant 0 : index
    %11 = vector.load %arg2[%c0_9, %c0_10] : memref<32x128xf32, #tpu.memory_space<vmem>>, vector<32x128xf32>
    %cst_11 = arith.constant dense<0.000000e+00> : vector<2x128xf32>
    %12 = tpu.matmul %6, %11, %cst_11 {dimension_numbers = #tpu.dot_dimension_numbers<[1], [0], [0], [1], [0, 0, 1, 1], [], []>} : vector<2x32xf32>, vector<32x128xf32>, vector<2x128xf32> -> vector<2x128xf32>
    %13 = arith.addf %10, %12 : vector<2x128xf32>
    %14 = vector.extract_strided_slice %13 {offsets = [0, 0], sizes = [2, 32], strides = [1, 1]} : vector<2x128xf32> to vector<2x32xf32>
    %15 = arith.negf %14 : vector<2x32xf32>
    %16 = math.exp %15 : vector<2x32xf32>
    %cst_12 = arith.constant 1.000000e+00 : f32
    %17 = vector.broadcast %cst_12 : f32 to vector<2x32xf32>
    %18 = arith.addf %17, %16 : vector<2x32xf32>
    %19 = arith.divf %17, %18 : vector<2x32xf32>
    %20 = vector.extract_strided_slice %13 {offsets = [0, 32], sizes = [2, 32], strides = [1, 1]} : vector<2x128xf32> to vector<2x32xf32>
    %21 = arith.negf %20 : vector<2x32xf32>
    %22 = math.exp %21 : vector<2x32xf32>
    %cst_13 = arith.constant 1.000000e+00 : f32
    %23 = vector.broadcast %cst_13 : f32 to vector<2x32xf32>
    %24 = arith.addf %23, %22 : vector<2x32xf32>
    %25 = arith.divf %23, %24 : vector<2x32xf32>
    %26 = vector.extract_strided_slice %13 {offsets = [0, 64], sizes = [2, 32], strides = [1, 1]} : vector<2x128xf32> to vector<2x32xf32>
    %27 = math.tanh %26 : vector<2x32xf32>
    %28 = vector.extract_strided_slice %13 {offsets = [0, 96], sizes = [2, 32], strides = [1, 1]} : vector<2x128xf32> to vector<2x32xf32>
    %29 = arith.negf %28 : vector<2x32xf32>
    %30 = math.exp %29 : vector<2x32xf32>
    %cst_14 = arith.constant 1.000000e+00 : f32
    %31 = vector.broadcast %cst_14 : f32 to vector<2x32xf32>
    %32 = arith.addf %31, %30 : vector<2x32xf32>
    %33 = arith.divf %31, %32 : vector<2x32xf32>
    %34 = arith.mulf %25, %8 : vector<2x32xf32>
    %35 = arith.mulf %19, %27 : vector<2x32xf32>
    %36 = arith.addf %34, %35 : vector<2x32xf32>
    %37 = math.tanh %36 : vector<2x32xf32>
    %38 = arith.mulf %33, %37 : vector<2x32xf32>
    %c0_15 = arith.constant 0 : index
    %c0_16 = arith.constant 0 : index
    %39 = vector.load %arg4[%c0_15, %c0_16] : memref<32x128xf32, #tpu.memory_space<vmem>>, vector<32x128xf32>
    %cst_17 = arith.constant dense<0.000000e+00> : vector<2x128xf32>
    %40 = tpu.matmul %38, %39, %cst_17 {dimension_numbers = #tpu.dot_dimension_numbers<[1], [0], [0], [1], [0, 0, 1, 1], [], []>} : vector<2x32xf32>, vector<32x128xf32>, vector<2x128xf32> -> vector<2x128xf32>
    %c0_18 = arith.constant 0 : index
    %c0_19 = arith.constant 0 : index
    %41 = vector.load %arg5[%c0_18, %c0_19] : memref<32x128xf32, #tpu.memory_space<vmem>>, vector<32x128xf32>
    %cst_20 = arith.constant dense<0.000000e+00> : vector<2x128xf32>
    %42 = tpu.matmul %7, %41, %cst_20 {dimension_numbers = #tpu.dot_dimension_numbers<[1], [0], [0], [1], [0, 0, 1, 1], [], []>} : vector<2x32xf32>, vector<32x128xf32>, vector<2x128xf32> -> vector<2x128xf32>
    %43 = arith.addf %40, %42 : vector<2x128xf32>
    %c0_21 = arith.constant 0 : index
    %c0_22 = arith.constant 0 : index
    %44 = vector.load %arg6[%c0_21, %c0_22] : memref<1x128xf32, #tpu.memory_space<vmem>>, vector<1x128xf32>
    %45 = vector.broadcast %44 : vector<1x128xf32> to vector<2x128xf32>
    %46 = arith.addf %43, %45 : vector<2x128xf32>
    %47 = vector.extract_strided_slice %46 {offsets = [0, 0], sizes = [2, 32], strides = [1, 1]} : vector<2x128xf32> to vector<2x32xf32>
    %48 = arith.negf %47 : vector<2x32xf32>
    %49 = math.exp %48 : vector<2x32xf32>
    %cst_23 = arith.constant 1.000000e+00 : f32
    %50 = vector.broadcast %cst_23 : f32 to vector<2x32xf32>
    %51 = arith.addf %50, %49 : vector<2x32xf32>
    %52 = arith.divf %50, %51 : vector<2x32xf32>
    %53 = vector.extract_strided_slice %46 {offsets = [0, 32], sizes = [2, 32], strides = [1, 1]} : vector<2x128xf32> to vector<2x32xf32>
    %54 = arith.negf %53 : vector<2x32xf32>
    %55 = math.exp %54 : vector<2x32xf32>
    %cst_24 = arith.constant 1.000000e+00 : f32
    %56 = vector.broadcast %cst_24 : f32 to vector<2x32xf32>
    %57 = arith.addf %56, %55 : vector<2x32xf32>
    %58 = arith.divf %56, %57 : vector<2x32xf32>
    %59 = vector.extract_strided_slice %46 {offsets = [0, 64], sizes = [2, 32], strides = [1, 1]} : vector<2x128xf32> to vector<2x32xf32>
    %60 = math.tanh %59 : vector<2x32xf32>
    %61 = vector.extract_strided_slice %46 {offsets = [0, 96], sizes = [2, 32], strides = [1, 1]} : vector<2x128xf32> to vector<2x32xf32>
    %62 = arith.negf %61 : vector<2x32xf32>
    %63 = math.exp %62 : vector<2x32xf32>
    %cst_25 = arith.constant 1.000000e+00 : f32
    %64 = vector.broadcast %cst_25 : f32 to vector<2x32xf32>
    %65 = arith.addf %64, %63 : vector<2x32xf32>
    %66 = arith.divf %64, %65 : vector<2x32xf32>
    %67 = arith.mulf %58, %9 : vector<2x32xf32>
    %68 = arith.mulf %52, %60 : vector<2x32xf32>
    %69 = arith.addf %67, %68 : vector<2x32xf32>
    %70 = math.tanh %69 : vector<2x32xf32>
    %71 = arith.mulf %66, %70 : vector<2x32xf32>
    %c0_26 = arith.constant 0 : index
    %c0_27 = arith.constant 0 : index
    %72 = vector.load %arg11[%c0_26, %c0_27] : memref<16x32xf32, #tpu.memory_space<vmem>>, vector<2x32xf32>
    tpu.vector_store %arg11[%c0_26, %c0_27], %71 {strides = array<i32>} : memref<16x32xf32, #tpu.memory_space<vmem>>, vector<2x32xf32>,
    %73 = vector.extract_strided_slice %5 {offsets = [2, 0], sizes = [2, 128], strides = [1, 1]} : vector<16x128xf32> to vector<2x128xf32>
    %c0_28 = arith.constant 0 : index
    %c0_29 = arith.constant 0 : index
    %74 = vector.load %arg2[%c0_28, %c0_29] : memref<32x128xf32, #tpu.memory_space<vmem>>, vector<32x128xf32>
    %cst_30 = arith.constant dense<0.000000e+00> : vector<2x128xf32>
    %75 = tpu.matmul %38, %74, %cst_30 {dimension_numbers = #tpu.dot_dimension_numbers<[1], [0], [0], [1], [0, 0, 1, 1], [], []>} : vector<2x32xf32>, vector<32x128xf32>, vector<2x128xf32> -> vector<2x128xf32>
    %76 = arith.addf %73, %75 : vector<2x128xf32>
    %77 = vector.extract_strided_slice %76 {offsets = [0, 0], sizes = [2, 32], strides = [1, 1]} : vector<2x128xf32> to vector<2x32xf32>
    %78 = arith.negf %77 : vector<2x32xf32>
    %79 = math.exp %78 : vector<2x32xf32>
    %cst_31 = arith.constant 1.000000e+00 : f32
    %80 = vector.broadcast %cst_31 : f32 to vector<2x32xf32>
    %81 = arith.addf %80, %79 : vector<2x32xf32>
    %82 = arith.divf %80, %81 : vector<2x32xf32>
    %83 = vector.extract_strided_slice %76 {offsets = [0, 32], sizes = [2, 32], strides = [1, 1]} : vector<2x128xf32> to vector<2x32xf32>
    %84 = arith.negf %83 : vector<2x32xf32>
    %85 = math.exp %84 : vector<2x32xf32>
    %cst_32 = arith.constant 1.000000e+00 : f32
    %86 = vector.broadcast %cst_32 : f32 to vector<2x32xf32>
    %87 = arith.addf %86, %85 : vector<2x32xf32>
    %88 = arith.divf %86, %87 : vector<2x32xf32>
    %89 = vector.extract_strided_slice %76 {offsets = [0, 64], sizes = [2, 32], strides = [1, 1]} : vector<2x128xf32> to vector<2x32xf32>
    %90 = math.tanh %89 : vector<2x32xf32>
    %91 = vector.extract_strided_slice %76 {offsets = [0, 96], sizes = [2, 32], strides = [1, 1]} : vector<2x128xf32> to vector<2x32xf32>
    %92 = arith.negf %91 : vector<2x32xf32>
    %93 = math.exp %92 : vector<2x32xf32>
    %cst_33 = arith.constant 1.000000e+00 : f32
    %94 = vector.broadcast %cst_33 : f32 to vector<2x32xf32>
    %95 = arith.addf %94, %93 : vector<2x32xf32>
    %96 = arith.divf %94, %95 : vector<2x32xf32>
    %97 = arith.mulf %88, %36 : vector<2x32xf32>
    %98 = arith.mulf %82, %90 : vector<2x32xf32>
    %99 = arith.addf %97, %98 : vector<2x32xf32>
    %100 = math.tanh %99 : vector<2x32xf32>
    %101 = arith.mulf %96, %100 : vector<2x32xf32>
    %c0_34 = arith.constant 0 : index
    %c0_35 = arith.constant 0 : index
    %102 = vector.load %arg4[%c0_34, %c0_35] : memref<32x128xf32, #tpu.memory_space<vmem>>, vector<32x128xf32>
    %cst_36 = arith.constant dense<0.000000e+00> : vector<2x128xf32>
    %103 = tpu.matmul %101, %102, %cst_36 {dimension_numbers = #tpu.dot_dimension_numbers<[1], [0], [0], [1], [0, 0, 1, 1], [], []>} : vector<2x32xf32>, vector<32x128xf32>, vector<2x128xf32> -> vector<2x128xf32>
    %c0_37 = arith.constant 0 : index
    %c0_38 = arith.constant 0 : index
    %104 = vector.load %arg5[%c0_37, %c0_38] : memref<32x128xf32, #tpu.memory_space<vmem>>, vector<32x128xf32>
    %cst_39 = arith.constant dense<0.000000e+00> : vector<2x128xf32>
    %105 = tpu.matmul %71, %104, %cst_39 {dimension_numbers = #tpu.dot_dimension_numbers<[1], [0], [0], [1], [0, 0, 1, 1], [], []>} : vector<2x32xf32>, vector<32x128xf32>, vector<2x128xf32> -> vector<2x128xf32>
    %106 = arith.addf %103, %105 : vector<2x128xf32>
    %c0_40 = arith.constant 0 : index
    %c0_41 = arith.constant 0 : index
    %107 = vector.load %arg6[%c0_40, %c0_41] : memref<1x128xf32, #tpu.memory_space<vmem>>, vector<1x128xf32>
    %108 = vector.broadcast %107 : vector<1x128xf32> to vector<2x128xf32>
    %109 = arith.addf %106, %108 : vector<2x128xf32>
    %110 = vector.extract_strided_slice %109 {offsets = [0, 0], sizes = [2, 32], strides = [1, 1]} : vector<2x128xf32> to vector<2x32xf32>
    %111 = arith.negf %110 : vector<2x32xf32>
    %112 = math.exp %111 : vector<2x32xf32>
    %cst_42 = arith.constant 1.000000e+00 : f32
    %113 = vector.broadcast %cst_42 : f32 to vector<2x32xf32>
    %114 = arith.addf %113, %112 : vector<2x32xf32>
    %115 = arith.divf %113, %114 : vector<2x32xf32>
    %116 = vector.extract_strided_slice %109 {offsets = [0, 32], sizes = [2, 32], strides = [1, 1]} : vector<2x128xf32> to vector<2x32xf32>
    %117 = arith.negf %116 : vector<2x32xf32>
    %118 = math.exp %117 : vector<2x32xf32>
    %cst_43 = arith.constant 1.000000e+00 : f32
    %119 = vector.broadcast %cst_43 : f32 to vector<2x32xf32>
    %120 = arith.addf %119, %118 : vector<2x32xf32>
    %121 = arith.divf %119, %120 : vector<2x32xf32>
    %122 = vector.extract_strided_slice %109 {offsets = [0, 64], sizes = [2, 32], strides = [1, 1]} : vector<2x128xf32> to vector<2x32xf32>
    %123 = math.tanh %122 : vector<2x32xf32>
    %124 = vector.extract_strided_slice %109 {offsets = [0, 96], sizes = [2, 32], strides = [1, 1]} : vector<2x128xf32> to vector<2x32xf32>
    %125 = arith.negf %124 : vector<2x32xf32>
    %126 = math.exp %125 : vector<2x32xf32>
    %cst_44 = arith.constant 1.000000e+00 : f32
    %127 = vector.broadcast %cst_44 : f32 to vector<2x32xf32>
    %128 = arith.addf %127, %126 : vector<2x32xf32>
    %129 = arith.divf %127, %128 : vector<2x32xf32>
    %130 = arith.mulf %121, %69 : vector<2x32xf32>
    %131 = arith.mulf %115, %123 : vector<2x32xf32>
    %132 = arith.addf %130, %131 : vector<2x32xf32>
    %133 = math.tanh %132 : vector<2x32xf32>
    %134 = arith.mulf %129, %133 : vector<2x32xf32>
    %c2 = arith.constant 2 : index
    %c0_45 = arith.constant 0 : index
    %135 = vector.load %arg11[%c2, %c0_45] : memref<16x32xf32, #tpu.memory_space<vmem>>, vector<2x32xf32>
    tpu.vector_store %arg11[%c2, %c0_45], %134 {strides = array<i32>} : memref<16x32xf32, #tpu.memory_space<vmem>>, vector<2x32xf32>,
    %136 = vector.extract_strided_slice %5 {offsets = [4, 0], sizes = [2, 128], strides = [1, 1]} : vector<16x128xf32> to vector<2x128xf32>
    %c0_46 = arith.constant 0 : index
    %c0_47 = arith.constant 0 : index
    %137 = vector.load %arg2[%c0_46, %c0_47] : memref<32x128xf32, #tpu.memory_space<vmem>>, vector<32x128xf32>
    %cst_48 = arith.constant dense<0.000000e+00> : vector<2x128xf32>
    %138 = tpu.matmul %101, %137, %cst_48 {dimension_numbers = #tpu.dot_dimension_numbers<[1], [0], [0], [1], [0, 0, 1, 1], [], []>} : vector<2x32xf32>, vector<32x128xf32>, vector<2x128xf32> -> vector<2x128xf32>
    %139 = arith.addf %136, %138 : vector<2x128xf32>
    %140 = vector.extract_strided_slice %139 {offsets = [0, 0], sizes = [2, 32], strides = [1, 1]} : vector<2x128xf32> to vector<2x32xf32>
    %141 = arith.negf %140 : vector<2x32xf32>
    %142 = math.exp %141 : vector<2x32xf32>
    %cst_49 = arith.constant 1.000000e+00 : f32
    %143 = vector.broadcast %cst_49 : f32 to vector<2x32xf32>
    %144 = arith.addf %143, %142 : vector<2x32xf32>
    %145 = arith.divf %143, %144 : vector<2x32xf32>
    %146 = vector.extract_strided_slice %139 {offsets = [0, 32], sizes = [2, 32], strides = [1, 1]} : vector<2x128xf32> to vector<2x32xf32>
    %147 = arith.negf %146 : vector<2x32xf32>
    %148 = math.exp %147 : vector<2x32xf32>
    %cst_50 = arith.constant 1.000000e+00 : f32
    %149 = vector.broadcast %cst_50 : f32 to vector<2x32xf32>
    %150 = arith.addf %149, %148 : vector<2x32xf32>
    %151 = arith.divf %149, %150 : vector<2x32xf32>
    %152 = vector.extract_strided_slice %139 {offsets = [0, 64], sizes = [2, 32], strides = [1, 1]} : vector<2x128xf32> to vector<2x32xf32>
    %153 = math.tanh %152 : vector<2x32xf32>
    %154 = vector.extract_strided_slice %139 {offsets = [0, 96], sizes = [2, 32], strides = [1, 1]} : vector<2x128xf32> to vector<2x32xf32>
    %155 = arith.negf %154 : vector<2x32xf32>
    %156 = math.exp %155 : vector<2x32xf32>
    %cst_51 = arith.constant 1.000000e+00 : f32
    %157 = vector.broadcast %cst_51 : f32 to vector<2x32xf32>
    %158 = arith.addf %157, %156 : vector<2x32xf32>
    %159 = arith.divf %157, %158 : vector<2x32xf32>
    %160 = arith.mulf %151, %99 : vector<2x32xf32>
    %161 = arith.mulf %145, %153 : vector<2x32xf32>
    %162 = arith.addf %160, %161 : vector<2x32xf32>
    %163 = math.tanh %162 : vector<2x32xf32>
    %164 = arith.mulf %159, %163 : vector<2x32xf32>
    %c0_52 = arith.constant 0 : index
    %c0_53 = arith.constant 0 : index
    %165 = vector.load %arg4[%c0_52, %c0_53] : memref<32x128xf32, #tpu.memory_space<vmem>>, vector<32x128xf32>
    %cst_54 = arith.constant dense<0.000000e+00> : vector<2x128xf32>
    %166 = tpu.matmul %164, %165, %cst_54 {dimension_numbers = #tpu.dot_dimension_numbers<[1], [0], [0], [1], [0, 0, 1, 1], [], []>} : vector<2x32xf32>, vector<32x128xf32>, vector<2x128xf32> -> vector<2x128xf32>
    %c0_55 = arith.constant 0 : index
    %c0_56 = arith.constant 0 : index
    %167 = vector.load %arg5[%c0_55, %c0_56] : memref<32x128xf32, #tpu.memory_space<vmem>>, vector<32x128xf32>
    %cst_57 = arith.constant dense<0.000000e+00> : vector<2x128xf32>
    %168 = tpu.matmul %134, %167, %cst_57 {dimension_numbers = #tpu.dot_dimension_numbers<[1], [0], [0], [1], [0, 0, 1, 1], [], []>} : vector<2x32xf32>, vector<32x128xf32>, vector<2x128xf32> -> vector<2x128xf32>
    %169 = arith.addf %166, %168 : vector<2x128xf32>
    %c0_58 = arith.constant 0 : index
    %c0_59 = arith.constant 0 : index
    %170 = vector.load %arg6[%c0_58, %c0_59] : memref<1x128xf32, #tpu.memory_space<vmem>>, vector<1x128xf32>
    %171 = vector.broadcast %170 : vector<1x128xf32> to vector<2x128xf32>
    %172 = arith.addf %169, %171 : vector<2x128xf32>
    %173 = vector.extract_strided_slice %172 {offsets = [0, 0], sizes = [2, 32], strides = [1, 1]} : vector<2x128xf32> to vector<2x32xf32>
    %174 = arith.negf %173 : vector<2x32xf32>
    %175 = math.exp %174 : vector<2x32xf32>
    %cst_60 = arith.constant 1.000000e+00 : f32
    %176 = vector.broadcast %cst_60 : f32 to vector<2x32xf32>
    %177 = arith.addf %176, %175 : vector<2x32xf32>
    %178 = arith.divf %176, %177 : vector<2x32xf32>
    %179 = vector.extract_strided_slice %172 {offsets = [0, 32], sizes = [2, 32], strides = [1, 1]} : vector<2x128xf32> to vector<2x32xf32>
    %180 = arith.negf %179 : vector<2x32xf32>
    %181 = math.exp %180 : vector<2x32xf32>
    %cst_61 = arith.constant 1.000000e+00 : f32
    %182 = vector.broadcast %cst_61 : f32 to vector<2x32xf32>
    %183 = arith.addf %182, %181 : vector<2x32xf32>
    %184 = arith.divf %182, %183 : vector<2x32xf32>
    %185 = vector.extract_strided_slice %172 {offsets = [0, 64], sizes = [2, 32], strides = [1, 1]} : vector<2x128xf32> to vector<2x32xf32>
    %186 = math.tanh %185 : vector<2x32xf32>
    %187 = vector.extract_strided_slice %172 {offsets = [0, 96], sizes = [2, 32], strides = [1, 1]} : vector<2x128xf32> to vector<2x32xf32>
    %188 = arith.negf %187 : vector<2x32xf32>
    %189 = math.exp %188 : vector<2x32xf32>
    %cst_62 = arith.constant 1.000000e+00 : f32
    %190 = vector.broadcast %cst_62 : f32 to vector<2x32xf32>
    %191 = arith.addf %190, %189 : vector<2x32xf32>
    %192 = arith.divf %190, %191 : vector<2x32xf32>
    %193 = arith.mulf %184, %132 : vector<2x32xf32>
    %194 = arith.mulf %178, %186 : vector<2x32xf32>
    %195 = arith.addf %193, %194 : vector<2x32xf32>
    %196 = math.tanh %195 : vector<2x32xf32>
    %197 = arith.mulf %192, %196 : vector<2x32xf32>
    %c4 = arith.constant 4 : index
    %c0_63 = arith.constant 0 : index
    %198 = vector.load %arg11[%c4, %c0_63] : memref<16x32xf32, #tpu.memory_space<vmem>>, vector<2x32xf32>
    tpu.vector_store %arg11[%c4, %c0_63], %197 {strides = array<i32>} : memref<16x32xf32, #tpu.memory_space<vmem>>, vector<2x32xf32>,
    %199 = vector.extract_strided_slice %5 {offsets = [6, 0], sizes = [2, 128], strides = [1, 1]} : vector<16x128xf32> to vector<2x128xf32>
    %c0_64 = arith.constant 0 : index
    %c0_65 = arith.constant 0 : index
    %200 = vector.load %arg2[%c0_64, %c0_65] : memref<32x128xf32, #tpu.memory_space<vmem>>, vector<32x128xf32>
    %cst_66 = arith.constant dense<0.000000e+00> : vector<2x128xf32>
    %201 = tpu.matmul %164, %200, %cst_66 {dimension_numbers = #tpu.dot_dimension_numbers<[1], [0], [0], [1], [0, 0, 1, 1], [], []>} : vector<2x32xf32>, vector<32x128xf32>, vector<2x128xf32> -> vector<2x128xf32>
    %202 = arith.addf %199, %201 : vector<2x128xf32>
    %203 = vector.extract_strided_slice %202 {offsets = [0, 0], sizes = [2, 32], strides = [1, 1]} : vector<2x128xf32> to vector<2x32xf32>
    %204 = arith.negf %203 : vector<2x32xf32>
    %205 = math.exp %204 : vector<2x32xf32>
    %cst_67 = arith.constant 1.000000e+00 : f32
    %206 = vector.broadcast %cst_67 : f32 to vector<2x32xf32>
    %207 = arith.addf %206, %205 : vector<2x32xf32>
    %208 = arith.divf %206, %207 : vector<2x32xf32>
    %209 = vector.extract_strided_slice %202 {offsets = [0, 32], sizes = [2, 32], strides = [1, 1]} : vector<2x128xf32> to vector<2x32xf32>
    %210 = arith.negf %209 : vector<2x32xf32>
    %211 = math.exp %210 : vector<2x32xf32>
    %cst_68 = arith.constant 1.000000e+00 : f32
    %212 = vector.broadcast %cst_68 : f32 to vector<2x32xf32>
    %213 = arith.addf %212, %211 : vector<2x32xf32>
    %214 = arith.divf %212, %213 : vector<2x32xf32>
    %215 = vector.extract_strided_slice %202 {offsets = [0, 64], sizes = [2, 32], strides = [1, 1]} : vector<2x128xf32> to vector<2x32xf32>
    %216 = math.tanh %215 : vector<2x32xf32>
    %217 = vector.extract_strided_slice %202 {offsets = [0, 96], sizes = [2, 32], strides = [1, 1]} : vector<2x128xf32> to vector<2x32xf32>
    %218 = arith.negf %217 : vector<2x32xf32>
    %219 = math.exp %218 : vector<2x32xf32>
    %cst_69 = arith.constant 1.000000e+00 : f32
    %220 = vector.broadcast %cst_69 : f32 to vector<2x32xf32>
    %221 = arith.addf %220, %219 : vector<2x32xf32>
    %222 = arith.divf %220, %221 : vector<2x32xf32>
    %223 = arith.mulf %214, %162 : vector<2x32xf32>
    %224 = arith.mulf %208, %216 : vector<2x32xf32>
    %225 = arith.addf %223, %224 : vector<2x32xf32>
    %226 = math.tanh %225 : vector<2x32xf32>
    %227 = arith.mulf %222, %226 : vector<2x32xf32>
    %c0_70 = arith.constant 0 : index
    %c0_71 = arith.constant 0 : index
    %228 = vector.load %arg4[%c0_70, %c0_71] : memref<32x128xf32, #tpu.memory_space<vmem>>, vector<32x128xf32>
    %cst_72 = arith.constant dense<0.000000e+00> : vector<2x128xf32>
    %229 = tpu.matmul %227, %228, %cst_72 {dimension_numbers = #tpu.dot_dimension_numbers<[1], [0], [0], [1], [0, 0, 1, 1], [], []>} : vector<2x32xf32>, vector<32x128xf32>, vector<2x128xf32> -> vector<2x128xf32>
    %c0_73 = arith.constant 0 : index
    %c0_74 = arith.constant 0 : index
    %230 = vector.load %arg5[%c0_73, %c0_74] : memref<32x128xf32, #tpu.memory_space<vmem>>, vector<32x128xf32>
    %cst_75 = arith.constant dense<0.000000e+00> : vector<2x128xf32>
    %231 = tpu.matmul %197, %230, %cst_75 {dimension_numbers = #tpu.dot_dimension_numbers<[1], [0], [0], [1], [0, 0, 1, 1], [], []>} : vector<2x32xf32>, vector<32x128xf32>, vector<2x128xf32> -> vector<2x128xf32>
    %232 = arith.addf %229, %231 : vector<2x128xf32>
    %c0_76 = arith.constant 0 : index
    %c0_77 = arith.constant 0 : index
    %233 = vector.load %arg6[%c0_76, %c0_77] : memref<1x128xf32, #tpu.memory_space<vmem>>, vector<1x128xf32>
    %234 = vector.broadcast %233 : vector<1x128xf32> to vector<2x128xf32>
    %235 = arith.addf %232, %234 : vector<2x128xf32>
    %236 = vector.extract_strided_slice %235 {offsets = [0, 0], sizes = [2, 32], strides = [1, 1]} : vector<2x128xf32> to vector<2x32xf32>
    %237 = arith.negf %236 : vector<2x32xf32>
    %238 = math.exp %237 : vector<2x32xf32>
    %cst_78 = arith.constant 1.000000e+00 : f32
    %239 = vector.broadcast %cst_78 : f32 to vector<2x32xf32>
    %240 = arith.addf %239, %238 : vector<2x32xf32>
    %241 = arith.divf %239, %240 : vector<2x32xf32>
    %242 = vector.extract_strided_slice %235 {offsets = [0, 32], sizes = [2, 32], strides = [1, 1]} : vector<2x128xf32> to vector<2x32xf32>
    %243 = arith.negf %242 : vector<2x32xf32>
    %244 = math.exp %243 : vector<2x32xf32>
    %cst_79 = arith.constant 1.000000e+00 : f32
    %245 = vector.broadcast %cst_79 : f32 to vector<2x32xf32>
    %246 = arith.addf %245, %244 : vector<2x32xf32>
    %247 = arith.divf %245, %246 : vector<2x32xf32>
    %248 = vector.extract_strided_slice %235 {offsets = [0, 64], sizes = [2, 32], strides = [1, 1]} : vector<2x128xf32> to vector<2x32xf32>
    %249 = math.tanh %248 : vector<2x32xf32>
    %250 = vector.extract_strided_slice %235 {offsets = [0, 96], sizes = [2, 32], strides = [1, 1]} : vector<2x128xf32> to vector<2x32xf32>
    %251 = arith.negf %250 : vector<2x32xf32>
    %252 = math.exp %251 : vector<2x32xf32>
    %cst_80 = arith.constant 1.000000e+00 : f32
    %253 = vector.broadcast %cst_80 : f32 to vector<2x32xf32>
    %254 = arith.addf %253, %252 : vector<2x32xf32>
    %255 = arith.divf %253, %254 : vector<2x32xf32>
    %256 = arith.mulf %247, %195 : vector<2x32xf32>
    %257 = arith.mulf %241, %249 : vector<2x32xf32>
    %258 = arith.addf %256, %257 : vector<2x32xf32>
    %259 = math.tanh %258 : vector<2x32xf32>
    %260 = arith.mulf %255, %259 : vector<2x32xf32>
    %c6 = arith.constant 6 : index
    %c0_81 = arith.constant 0 : index
    %261 = vector.load %arg11[%c6, %c0_81] : memref<16x32xf32, #tpu.memory_space<vmem>>, vector<2x32xf32>
    tpu.vector_store %arg11[%c6, %c0_81], %260 {strides = array<i32>} : memref<16x32xf32, #tpu.memory_space<vmem>>, vector<2x32xf32>,
    %262 = vector.extract_strided_slice %5 {offsets = [8, 0], sizes = [2, 128], strides = [1, 1]} : vector<16x128xf32> to vector<2x128xf32>
    %c0_82 = arith.constant 0 : index
    %c0_83 = arith.constant 0 : index
    %263 = vector.load %arg2[%c0_82, %c0_83] : memref<32x128xf32, #tpu.memory_space<vmem>>, vector<32x128xf32>
    %cst_84 = arith.constant dense<0.000000e+00> : vector<2x128xf32>
    %264 = tpu.matmul %227, %263, %cst_84 {dimension_numbers = #tpu.dot_dimension_numbers<[1], [0], [0], [1], [0, 0, 1, 1], [], []>} : vector<2x32xf32>, vector<32x128xf32>, vector<2x128xf32> -> vector<2x128xf32>
    %265 = arith.addf %262, %264 : vector<2x128xf32>
    %266 = vector.extract_strided_slice %265 {offsets = [0, 0], sizes = [2, 32], strides = [1, 1]} : vector<2x128xf32> to vector<2x32xf32>
    %267 = arith.negf %266 : vector<2x32xf32>
    %268 = math.exp %267 : vector<2x32xf32>
    %cst_85 = arith.constant 1.000000e+00 : f32
    %269 = vector.broadcast %cst_85 : f32 to vector<2x32xf32>
    %270 = arith.addf %269, %268 : vector<2x32xf32>
    %271 = arith.divf %269, %270 : vector<2x32xf32>
    %272 = vector.extract_strided_slice %265 {offsets = [0, 32], sizes = [2, 32], strides = [1, 1]} : vector<2x128xf32> to vector<2x32xf32>
    %273 = arith.negf %272 : vector<2x32xf32>
    %274 = math.exp %273 : vector<2x32xf32>
    %cst_86 = arith.constant 1.000000e+00 : f32
    %275 = vector.broadcast %cst_86 : f32 to vector<2x32xf32>
    %276 = arith.addf %275, %274 : vector<2x32xf32>
    %277 = arith.divf %275, %276 : vector<2x32xf32>
    %278 = vector.extract_strided_slice %265 {offsets = [0, 64], sizes = [2, 32], strides = [1, 1]} : vector<2x128xf32> to vector<2x32xf32>
    %279 = math.tanh %278 : vector<2x32xf32>
    %280 = vector.extract_strided_slice %265 {offsets = [0, 96], sizes = [2, 32], strides = [1, 1]} : vector<2x128xf32> to vector<2x32xf32>
    %281 = arith.negf %280 : vector<2x32xf32>
    %282 = math.exp %281 : vector<2x32xf32>
    %cst_87 = arith.constant 1.000000e+00 : f32
    %283 = vector.broadcast %cst_87 : f32 to vector<2x32xf32>
    %284 = arith.addf %283, %282 : vector<2x32xf32>
    %285 = arith.divf %283, %284 : vector<2x32xf32>
    %286 = arith.mulf %277, %225 : vector<2x32xf32>
    %287 = arith.mulf %271, %279 : vector<2x32xf32>
    %288 = arith.addf %286, %287 : vector<2x32xf32>
    %289 = math.tanh %288 : vector<2x32xf32>
    %290 = arith.mulf %285, %289 : vector<2x32xf32>
    %c0_88 = arith.constant 0 : index
    %c0_89 = arith.constant 0 : index
    %291 = vector.load %arg4[%c0_88, %c0_89] : memref<32x128xf32, #tpu.memory_space<vmem>>, vector<32x128xf32>
    %cst_90 = arith.constant dense<0.000000e+00> : vector<2x128xf32>
    %292 = tpu.matmul %290, %291, %cst_90 {dimension_numbers = #tpu.dot_dimension_numbers<[1], [0], [0], [1], [0, 0, 1, 1], [], []>} : vector<2x32xf32>, vector<32x128xf32>, vector<2x128xf32> -> vector<2x128xf32>
    %c0_91 = arith.constant 0 : index
    %c0_92 = arith.constant 0 : index
    %293 = vector.load %arg5[%c0_91, %c0_92] : memref<32x128xf32, #tpu.memory_space<vmem>>, vector<32x128xf32>
    %cst_93 = arith.constant dense<0.000000e+00> : vector<2x128xf32>
    %294 = tpu.matmul %260, %293, %cst_93 {dimension_numbers = #tpu.dot_dimension_numbers<[1], [0], [0], [1], [0, 0, 1, 1], [], []>} : vector<2x32xf32>, vector<32x128xf32>, vector<2x128xf32> -> vector<2x128xf32>
    %295 = arith.addf %292, %294 : vector<2x128xf32>
    %c0_94 = arith.constant 0 : index
    %c0_95 = arith.constant 0 : index
    %296 = vector.load %arg6[%c0_94, %c0_95] : memref<1x128xf32, #tpu.memory_space<vmem>>, vector<1x128xf32>
    %297 = vector.broadcast %296 : vector<1x128xf32> to vector<2x128xf32>
    %298 = arith.addf %295, %297 : vector<2x128xf32>
    %299 = vector.extract_strided_slice %298 {offsets = [0, 0], sizes = [2, 32], strides = [1, 1]} : vector<2x128xf32> to vector<2x32xf32>
    %300 = arith.negf %299 : vector<2x32xf32>
    %301 = math.exp %300 : vector<2x32xf32>
    %cst_96 = arith.constant 1.000000e+00 : f32
    %302 = vector.broadcast %cst_96 : f32 to vector<2x32xf32>
    %303 = arith.addf %302, %301 : vector<2x32xf32>
    %304 = arith.divf %302, %303 : vector<2x32xf32>
    %305 = vector.extract_strided_slice %298 {offsets = [0, 32], sizes = [2, 32], strides = [1, 1]} : vector<2x128xf32> to vector<2x32xf32>
    %306 = arith.negf %305 : vector<2x32xf32>
    %307 = math.exp %306 : vector<2x32xf32>
    %cst_97 = arith.constant 1.000000e+00 : f32
    %308 = vector.broadcast %cst_97 : f32 to vector<2x32xf32>
    %309 = arith.addf %308, %307 : vector<2x32xf32>
    %310 = arith.divf %308, %309 : vector<2x32xf32>
    %311 = vector.extract_strided_slice %298 {offsets = [0, 64], sizes = [2, 32], strides = [1, 1]} : vector<2x128xf32> to vector<2x32xf32>
    %312 = math.tanh %311 : vector<2x32xf32>
    %313 = vector.extract_strided_slice %298 {offsets = [0, 96], sizes = [2, 32], strides = [1, 1]} : vector<2x128xf32> to vector<2x32xf32>
    %314 = arith.negf %313 : vector<2x32xf32>
    %315 = math.exp %314 : vector<2x32xf32>
    %cst_98 = arith.constant 1.000000e+00 : f32
    %316 = vector.broadcast %cst_98 : f32 to vector<2x32xf32>
    %317 = arith.addf %316, %315 : vector<2x32xf32>
    %318 = arith.divf %316, %317 : vector<2x32xf32>
    %319 = arith.mulf %310, %258 : vector<2x32xf32>
    %320 = arith.mulf %304, %312 : vector<2x32xf32>
    %321 = arith.addf %319, %320 : vector<2x32xf32>
    %322 = math.tanh %321 : vector<2x32xf32>
    %323 = arith.mulf %318, %322 : vector<2x32xf32>
    %c8 = arith.constant 8 : index
    %c0_99 = arith.constant 0 : index
    %324 = vector.load %arg11[%c8, %c0_99] : memref<16x32xf32, #tpu.memory_space<vmem>>, vector<2x32xf32>
    tpu.vector_store %arg11[%c8, %c0_99], %323 {strides = array<i32>} : memref<16x32xf32, #tpu.memory_space<vmem>>, vector<2x32xf32>,
    %325 = vector.extract_strided_slice %5 {offsets = [10, 0], sizes = [2, 128], strides = [1, 1]} : vector<16x128xf32> to vector<2x128xf32>
    %c0_100 = arith.constant 0 : index
    %c0_101 = arith.constant 0 : index
    %326 = vector.load %arg2[%c0_100, %c0_101] : memref<32x128xf32, #tpu.memory_space<vmem>>, vector<32x128xf32>
    %cst_102 = arith.constant dense<0.000000e+00> : vector<2x128xf32>
    %327 = tpu.matmul %290, %326, %cst_102 {dimension_numbers = #tpu.dot_dimension_numbers<[1], [0], [0], [1], [0, 0, 1, 1], [], []>} : vector<2x32xf32>, vector<32x128xf32>, vector<2x128xf32> -> vector<2x128xf32>
    %328 = arith.addf %325, %327 : vector<2x128xf32>
    %329 = vector.extract_strided_slice %328 {offsets = [0, 0], sizes = [2, 32], strides = [1, 1]} : vector<2x128xf32> to vector<2x32xf32>
    %330 = arith.negf %329 : vector<2x32xf32>
    %331 = math.exp %330 : vector<2x32xf32>
    %cst_103 = arith.constant 1.000000e+00 : f32
    %332 = vector.broadcast %cst_103 : f32 to vector<2x32xf32>
    %333 = arith.addf %332, %331 : vector<2x32xf32>
    %334 = arith.divf %332, %333 : vector<2x32xf32>
    %335 = vector.extract_strided_slice %328 {offsets = [0, 32], sizes = [2, 32], strides = [1, 1]} : vector<2x128xf32> to vector<2x32xf32>
    %336 = arith.negf %335 : vector<2x32xf32>
    %337 = math.exp %336 : vector<2x32xf32>
    %cst_104 = arith.constant 1.000000e+00 : f32
    %338 = vector.broadcast %cst_104 : f32 to vector<2x32xf32>
    %339 = arith.addf %338, %337 : vector<2x32xf32>
    %340 = arith.divf %338, %339 : vector<2x32xf32>
    %341 = vector.extract_strided_slice %328 {offsets = [0, 64], sizes = [2, 32], strides = [1, 1]} : vector<2x128xf32> to vector<2x32xf32>
    %342 = math.tanh %341 : vector<2x32xf32>
    %343 = vector.extract_strided_slice %328 {offsets = [0, 96], sizes = [2, 32], strides = [1, 1]} : vector<2x128xf32> to vector<2x32xf32>
    %344 = arith.negf %343 : vector<2x32xf32>
    %345 = math.exp %344 : vector<2x32xf32>
    %cst_105 = arith.constant 1.000000e+00 : f32
    %346 = vector.broadcast %cst_105 : f32 to vector<2x32xf32>
    %347 = arith.addf %346, %345 : vector<2x32xf32>
    %348 = arith.divf %346, %347 : vector<2x32xf32>
    %349 = arith.mulf %340, %288 : vector<2x32xf32>
    %350 = arith.mulf %334, %342 : vector<2x32xf32>
    %351 = arith.addf %349, %350 : vector<2x32xf32>
    %352 = math.tanh %351 : vector<2x32xf32>
    %353 = arith.mulf %348, %352 : vector<2x32xf32>
    %c0_106 = arith.constant 0 : index
    %c0_107 = arith.constant 0 : index
    %354 = vector.load %arg4[%c0_106, %c0_107] : memref<32x128xf32, #tpu.memory_space<vmem>>, vector<32x128xf32>
    %cst_108 = arith.constant dense<0.000000e+00> : vector<2x128xf32>
    %355 = tpu.matmul %353, %354, %cst_108 {dimension_numbers = #tpu.dot_dimension_numbers<[1], [0], [0], [1], [0, 0, 1, 1], [], []>} : vector<2x32xf32>, vector<32x128xf32>, vector<2x128xf32> -> vector<2x128xf32>
    %c0_109 = arith.constant 0 : index
    %c0_110 = arith.constant 0 : index
    %356 = vector.load %arg5[%c0_109, %c0_110] : memref<32x128xf32, #tpu.memory_space<vmem>>, vector<32x128xf32>
    %cst_111 = arith.constant dense<0.000000e+00> : vector<2x128xf32>
    %357 = tpu.matmul %323, %356, %cst_111 {dimension_numbers = #tpu.dot_dimension_numbers<[1], [0], [0], [1], [0, 0, 1, 1], [], []>} : vector<2x32xf32>, vector<32x128xf32>, vector<2x128xf32> -> vector<2x128xf32>
    %358 = arith.addf %355, %357 : vector<2x128xf32>
    %c0_112 = arith.constant 0 : index
    %c0_113 = arith.constant 0 : index
    %359 = vector.load %arg6[%c0_112, %c0_113] : memref<1x128xf32, #tpu.memory_space<vmem>>, vector<1x128xf32>
    %360 = vector.broadcast %359 : vector<1x128xf32> to vector<2x128xf32>
    %361 = arith.addf %358, %360 : vector<2x128xf32>
    %362 = vector.extract_strided_slice %361 {offsets = [0, 0], sizes = [2, 32], strides = [1, 1]} : vector<2x128xf32> to vector<2x32xf32>
    %363 = arith.negf %362 : vector<2x32xf32>
    %364 = math.exp %363 : vector<2x32xf32>
    %cst_114 = arith.constant 1.000000e+00 : f32
    %365 = vector.broadcast %cst_114 : f32 to vector<2x32xf32>
    %366 = arith.addf %365, %364 : vector<2x32xf32>
    %367 = arith.divf %365, %366 : vector<2x32xf32>
    %368 = vector.extract_strided_slice %361 {offsets = [0, 32], sizes = [2, 32], strides = [1, 1]} : vector<2x128xf32> to vector<2x32xf32>
    %369 = arith.negf %368 : vector<2x32xf32>
    %370 = math.exp %369 : vector<2x32xf32>
    %cst_115 = arith.constant 1.000000e+00 : f32
    %371 = vector.broadcast %cst_115 : f32 to vector<2x32xf32>
    %372 = arith.addf %371, %370 : vector<2x32xf32>
    %373 = arith.divf %371, %372 : vector<2x32xf32>
    %374 = vector.extract_strided_slice %361 {offsets = [0, 64], sizes = [2, 32], strides = [1, 1]} : vector<2x128xf32> to vector<2x32xf32>
    %375 = math.tanh %374 : vector<2x32xf32>
    %376 = vector.extract_strided_slice %361 {offsets = [0, 96], sizes = [2, 32], strides = [1, 1]} : vector<2x128xf32> to vector<2x32xf32>
    %377 = arith.negf %376 : vector<2x32xf32>
    %378 = math.exp %377 : vector<2x32xf32>
    %cst_116 = arith.constant 1.000000e+00 : f32
    %379 = vector.broadcast %cst_116 : f32 to vector<2x32xf32>
    %380 = arith.addf %379, %378 : vector<2x32xf32>
    %381 = arith.divf %379, %380 : vector<2x32xf32>
    %382 = arith.mulf %373, %321 : vector<2x32xf32>
    %383 = arith.mulf %367, %375 : vector<2x32xf32>
    %384 = arith.addf %382, %383 : vector<2x32xf32>
    %385 = math.tanh %384 : vector<2x32xf32>
    %386 = arith.mulf %381, %385 : vector<2x32xf32>
    %c10 = arith.constant 10 : index
    %c0_117 = arith.constant 0 : index
    %387 = vector.load %arg11[%c10, %c0_117] : memref<16x32xf32, #tpu.memory_space<vmem>>, vector<2x32xf32>
    tpu.vector_store %arg11[%c10, %c0_117], %386 {strides = array<i32>} : memref<16x32xf32, #tpu.memory_space<vmem>>, vector<2x32xf32>,
    %388 = vector.extract_strided_slice %5 {offsets = [12, 0], sizes = [2, 128], strides = [1, 1]} : vector<16x128xf32> to vector<2x128xf32>
    %c0_118 = arith.constant 0 : index
    %c0_119 = arith.constant 0 : index
    %389 = vector.load %arg2[%c0_118, %c0_119] : memref<32x128xf32, #tpu.memory_space<vmem>>, vector<32x128xf32>
    %cst_120 = arith.constant dense<0.000000e+00> : vector<2x128xf32>
    %390 = tpu.matmul %353, %389, %cst_120 {dimension_numbers = #tpu.dot_dimension_numbers<[1], [0], [0], [1], [0, 0, 1, 1], [], []>} : vector<2x32xf32>, vector<32x128xf32>, vector<2x128xf32> -> vector<2x128xf32>
    %391 = arith.addf %388, %390 : vector<2x128xf32>
    %392 = vector.extract_strided_slice %391 {offsets = [0, 0], sizes = [2, 32], strides = [1, 1]} : vector<2x128xf32> to vector<2x32xf32>
    %393 = arith.negf %392 : vector<2x32xf32>
    %394 = math.exp %393 : vector<2x32xf32>
    %cst_121 = arith.constant 1.000000e+00 : f32
    %395 = vector.broadcast %cst_121 : f32 to vector<2x32xf32>
    %396 = arith.addf %395, %394 : vector<2x32xf32>
    %397 = arith.divf %395, %396 : vector<2x32xf32>
    %398 = vector.extract_strided_slice %391 {offsets = [0, 32], sizes = [2, 32], strides = [1, 1]} : vector<2x128xf32> to vector<2x32xf32>
    %399 = arith.negf %398 : vector<2x32xf32>
    %400 = math.exp %399 : vector<2x32xf32>
    %cst_122 = arith.constant 1.000000e+00 : f32
    %401 = vector.broadcast %cst_122 : f32 to vector<2x32xf32>
    %402 = arith.addf %401, %400 : vector<2x32xf32>
    %403 = arith.divf %401, %402 : vector<2x32xf32>
    %404 = vector.extract_strided_slice %391 {offsets = [0, 64], sizes = [2, 32], strides = [1, 1]} : vector<2x128xf32> to vector<2x32xf32>
    %405 = math.tanh %404 : vector<2x32xf32>
    %406 = vector.extract_strided_slice %391 {offsets = [0, 96], sizes = [2, 32], strides = [1, 1]} : vector<2x128xf32> to vector<2x32xf32>
    %407 = arith.negf %406 : vector<2x32xf32>
    %408 = math.exp %407 : vector<2x32xf32>
    %cst_123 = arith.constant 1.000000e+00 : f32
    %409 = vector.broadcast %cst_123 : f32 to vector<2x32xf32>
    %410 = arith.addf %409, %408 : vector<2x32xf32>
    %411 = arith.divf %409, %410 : vector<2x32xf32>
    %412 = arith.mulf %403, %351 : vector<2x32xf32>
    %413 = arith.mulf %397, %405 : vector<2x32xf32>
    %414 = arith.addf %412, %413 : vector<2x32xf32>
    %415 = math.tanh %414 : vector<2x32xf32>
    %416 = arith.mulf %411, %415 : vector<2x32xf32>
    %c0_124 = arith.constant 0 : index
    %c0_125 = arith.constant 0 : index
    %417 = vector.load %arg4[%c0_124, %c0_125] : memref<32x128xf32, #tpu.memory_space<vmem>>, vector<32x128xf32>
    %cst_126 = arith.constant dense<0.000000e+00> : vector<2x128xf32>
    %418 = tpu.matmul %416, %417, %cst_126 {dimension_numbers = #tpu.dot_dimension_numbers<[1], [0], [0], [1], [0, 0, 1, 1], [], []>} : vector<2x32xf32>, vector<32x128xf32>, vector<2x128xf32> -> vector<2x128xf32>
    %c0_127 = arith.constant 0 : index
    %c0_128 = arith.constant 0 : index
    %419 = vector.load %arg5[%c0_127, %c0_128] : memref<32x128xf32, #tpu.memory_space<vmem>>, vector<32x128xf32>
    %cst_129 = arith.constant dense<0.000000e+00> : vector<2x128xf32>
    %420 = tpu.matmul %386, %419, %cst_129 {dimension_numbers = #tpu.dot_dimension_numbers<[1], [0], [0], [1], [0, 0, 1, 1], [], []>} : vector<2x32xf32>, vector<32x128xf32>, vector<2x128xf32> -> vector<2x128xf32>
    %421 = arith.addf %418, %420 : vector<2x128xf32>
    %c0_130 = arith.constant 0 : index
    %c0_131 = arith.constant 0 : index
    %422 = vector.load %arg6[%c0_130, %c0_131] : memref<1x128xf32, #tpu.memory_space<vmem>>, vector<1x128xf32>
    %423 = vector.broadcast %422 : vector<1x128xf32> to vector<2x128xf32>
    %424 = arith.addf %421, %423 : vector<2x128xf32>
    %425 = vector.extract_strided_slice %424 {offsets = [0, 0], sizes = [2, 32], strides = [1, 1]} : vector<2x128xf32> to vector<2x32xf32>
    %426 = arith.negf %425 : vector<2x32xf32>
    %427 = math.exp %426 : vector<2x32xf32>
    %cst_132 = arith.constant 1.000000e+00 : f32
    %428 = vector.broadcast %cst_132 : f32 to vector<2x32xf32>
    %429 = arith.addf %428, %427 : vector<2x32xf32>
    %430 = arith.divf %428, %429 : vector<2x32xf32>
    %431 = vector.extract_strided_slice %424 {offsets = [0, 32], sizes = [2, 32], strides = [1, 1]} : vector<2x128xf32> to vector<2x32xf32>
    %432 = arith.negf %431 : vector<2x32xf32>
    %433 = math.exp %432 : vector<2x32xf32>
    %cst_133 = arith.constant 1.000000e+00 : f32
    %434 = vector.broadcast %cst_133 : f32 to vector<2x32xf32>
    %435 = arith.addf %434, %433 : vector<2x32xf32>
    %436 = arith.divf %434, %435 : vector<2x32xf32>
    %437 = vector.extract_strided_slice %424 {offsets = [0, 64], sizes = [2, 32], strides = [1, 1]} : vector<2x128xf32> to vector<2x32xf32>
    %438 = math.tanh %437 : vector<2x32xf32>
    %439 = vector.extract_strided_slice %424 {offsets = [0, 96], sizes = [2, 32], strides = [1, 1]} : vector<2x128xf32> to vector<2x32xf32>
    %440 = arith.negf %439 : vector<2x32xf32>
    %441 = math.exp %440 : vector<2x32xf32>
    %cst_134 = arith.constant 1.000000e+00 : f32
    %442 = vector.broadcast %cst_134 : f32 to vector<2x32xf32>
    %443 = arith.addf %442, %441 : vector<2x32xf32>
    %444 = arith.divf %442, %443 : vector<2x32xf32>
    %445 = arith.mulf %436, %384 : vector<2x32xf32>
    %446 = arith.mulf %430, %438 : vector<2x32xf32>
    %447 = arith.addf %445, %446 : vector<2x32xf32>
    %448 = math.tanh %447 : vector<2x32xf32>
    %449 = arith.mulf %444, %448 : vector<2x32xf32>
    %c12 = arith.constant 12 : index
    %c0_135 = arith.constant 0 : index
    %450 = vector.load %arg11[%c12, %c0_135] : memref<16x32xf32, #tpu.memory_space<vmem>>, vector<2x32xf32>
    tpu.vector_store %arg11[%c12, %c0_135], %449 {strides = array<i32>} : memref<16x32xf32, #tpu.memory_space<vmem>>, vector<2x32xf32>,
    %451 = vector.extract_strided_slice %5 {offsets = [14, 0], sizes = [2, 128], strides = [1, 1]} : vector<16x128xf32> to vector<2x128xf32>
    %c0_136 = arith.constant 0 : index
    %c0_137 = arith.constant 0 : index
    %452 = vector.load %arg2[%c0_136, %c0_137] : memref<32x128xf32, #tpu.memory_space<vmem>>, vector<32x128xf32>
    %cst_138 = arith.constant dense<0.000000e+00> : vector<2x128xf32>
    %453 = tpu.matmul %416, %452, %cst_138 {dimension_numbers = #tpu.dot_dimension_numbers<[1], [0], [0], [1], [0, 0, 1, 1], [], []>} : vector<2x32xf32>, vector<32x128xf32>, vector<2x128xf32> -> vector<2x128xf32>
    %454 = arith.addf %451, %453 : vector<2x128xf32>
    %455 = vector.extract_strided_slice %454 {offsets = [0, 0], sizes = [2, 32], strides = [1, 1]} : vector<2x128xf32> to vector<2x32xf32>
    %456 = arith.negf %455 : vector<2x32xf32>
    %457 = math.exp %456 : vector<2x32xf32>
    %cst_139 = arith.constant 1.000000e+00 : f32
    %458 = vector.broadcast %cst_139 : f32 to vector<2x32xf32>
    %459 = arith.addf %458, %457 : vector<2x32xf32>
    %460 = arith.divf %458, %459 : vector<2x32xf32>
    %461 = vector.extract_strided_slice %454 {offsets = [0, 32], sizes = [2, 32], strides = [1, 1]} : vector<2x128xf32> to vector<2x32xf32>
    %462 = arith.negf %461 : vector<2x32xf32>
    %463 = math.exp %462 : vector<2x32xf32>
    %cst_140 = arith.constant 1.000000e+00 : f32
    %464 = vector.broadcast %cst_140 : f32 to vector<2x32xf32>
    %465 = arith.addf %464, %463 : vector<2x32xf32>
    %466 = arith.divf %464, %465 : vector<2x32xf32>
    %467 = vector.extract_strided_slice %454 {offsets = [0, 64], sizes = [2, 32], strides = [1, 1]} : vector<2x128xf32> to vector<2x32xf32>
    %468 = math.tanh %467 : vector<2x32xf32>
    %469 = vector.extract_strided_slice %454 {offsets = [0, 96], sizes = [2, 32], strides = [1, 1]} : vector<2x128xf32> to vector<2x32xf32>
    %470 = arith.negf %469 : vector<2x32xf32>
    %471 = math.exp %470 : vector<2x32xf32>
    %cst_141 = arith.constant 1.000000e+00 : f32
    %472 = vector.broadcast %cst_141 : f32 to vector<2x32xf32>
    %473 = arith.addf %472, %471 : vector<2x32xf32>
    %474 = arith.divf %472, %473 : vector<2x32xf32>
    %475 = arith.mulf %466, %414 : vector<2x32xf32>
    %476 = arith.mulf %460, %468 : vector<2x32xf32>
    %477 = arith.addf %475, %476 : vector<2x32xf32>
    %478 = math.tanh %477 : vector<2x32xf32>
    %479 = arith.mulf %474, %478 : vector<2x32xf32>
    %c0_142 = arith.constant 0 : index
    %c0_143 = arith.constant 0 : index
    %480 = vector.load %arg4[%c0_142, %c0_143] : memref<32x128xf32, #tpu.memory_space<vmem>>, vector<32x128xf32>
    %cst_144 = arith.constant dense<0.000000e+00> : vector<2x128xf32>
    %481 = tpu.matmul %479, %480, %cst_144 {dimension_numbers = #tpu.dot_dimension_numbers<[1], [0], [0], [1], [0, 0, 1, 1], [], []>} : vector<2x32xf32>, vector<32x128xf32>, vector<2x128xf32> -> vector<2x128xf32>
    %c0_145 = arith.constant 0 : index
    %c0_146 = arith.constant 0 : index
    %482 = vector.load %arg5[%c0_145, %c0_146] : memref<32x128xf32, #tpu.memory_space<vmem>>, vector<32x128xf32>
    %cst_147 = arith.constant dense<0.000000e+00> : vector<2x128xf32>
    %483 = tpu.matmul %449, %482, %cst_147 {dimension_numbers = #tpu.dot_dimension_numbers<[1], [0], [0], [1], [0, 0, 1, 1], [], []>} : vector<2x32xf32>, vector<32x128xf32>, vector<2x128xf32> -> vector<2x128xf32>
    %484 = arith.addf %481, %483 : vector<2x128xf32>
    %c0_148 = arith.constant 0 : index
    %c0_149 = arith.constant 0 : index
    %485 = vector.load %arg6[%c0_148, %c0_149] : memref<1x128xf32, #tpu.memory_space<vmem>>, vector<1x128xf32>
    %486 = vector.broadcast %485 : vector<1x128xf32> to vector<2x128xf32>
    %487 = arith.addf %484, %486 : vector<2x128xf32>
    %488 = vector.extract_strided_slice %487 {offsets = [0, 0], sizes = [2, 32], strides = [1, 1]} : vector<2x128xf32> to vector<2x32xf32>
    %489 = arith.negf %488 : vector<2x32xf32>
    %490 = math.exp %489 : vector<2x32xf32>
    %cst_150 = arith.constant 1.000000e+00 : f32
    %491 = vector.broadcast %cst_150 : f32 to vector<2x32xf32>
    %492 = arith.addf %491, %490 : vector<2x32xf32>
    %493 = arith.divf %491, %492 : vector<2x32xf32>
    %494 = vector.extract_strided_slice %487 {offsets = [0, 32], sizes = [2, 32], strides = [1, 1]} : vector<2x128xf32> to vector<2x32xf32>
    %495 = arith.negf %494 : vector<2x32xf32>
    %496 = math.exp %495 : vector<2x32xf32>
    %cst_151 = arith.constant 1.000000e+00 : f32
    %497 = vector.broadcast %cst_151 : f32 to vector<2x32xf32>
    %498 = arith.addf %497, %496 : vector<2x32xf32>
    %499 = arith.divf %497, %498 : vector<2x32xf32>
    %500 = vector.extract_strided_slice %487 {offsets = [0, 64], sizes = [2, 32], strides = [1, 1]} : vector<2x128xf32> to vector<2x32xf32>
    %501 = math.tanh %500 : vector<2x32xf32>
    %502 = vector.extract_strided_slice %487 {offsets = [0, 96], sizes = [2, 32], strides = [1, 1]} : vector<2x128xf32> to vector<2x32xf32>
    %503 = arith.negf %502 : vector<2x32xf32>
    %504 = math.exp %503 : vector<2x32xf32>
    %cst_152 = arith.constant 1.000000e+00 : f32
    %505 = vector.broadcast %cst_152 : f32 to vector<2x32xf32>
    %506 = arith.addf %505, %504 : vector<2x32xf32>
    %507 = arith.divf %505, %506 : vector<2x32xf32>
    %508 = arith.mulf %499, %447 : vector<2x32xf32>
    %509 = arith.mulf %493, %501 : vector<2x32xf32>
    %510 = arith.addf %508, %509 : vector<2x32xf32>
    %511 = math.tanh %510 : vector<2x32xf32>
    %512 = arith.mulf %507, %511 : vector<2x32xf32>
    %c14 = arith.constant 14 : index
    %c0_153 = arith.constant 0 : index
    %513 = vector.load %arg11[%c14, %c0_153] : memref<16x32xf32, #tpu.memory_space<vmem>>, vector<2x32xf32>
    tpu.vector_store %arg11[%c14, %c0_153], %512 {strides = array<i32>} : memref<16x32xf32, #tpu.memory_space<vmem>>, vector<2x32xf32>,
    %c0_154 = arith.constant 0 : index
    %c0_155 = arith.constant 0 : index
    %514 = vector.load %arg11[%c0_154, %c0_155] : memref<16x32xf32, #tpu.memory_space<vmem>>, vector<16x32xf32>
    %c0_156 = arith.constant 0 : index
    %c0_157 = arith.constant 0 : index
    %515 = vector.load %arg7[%c0_156, %c0_157] : memref<32x32xf32, #tpu.memory_space<vmem>>, vector<32x32xf32>
    %cst_158 = arith.constant dense<0.000000e+00> : vector<16x32xf32>
    %516 = tpu.matmul %514, %515, %cst_158 {dimension_numbers = #tpu.dot_dimension_numbers<[1], [0], [0], [1], [0, 0, 1, 1], [], []>} : vector<16x32xf32>, vector<32x32xf32>, vector<16x32xf32> -> vector<16x32xf32>
    %c0_159 = arith.constant 0 : index
    %c0_160 = arith.constant 0 : index
    %517 = vector.load %arg8[%c0_159, %c0_160] : memref<1x32xf32, #tpu.memory_space<vmem>>, vector<1x32xf32>
    %518 = vector.broadcast %517 : vector<1x32xf32> to vector<16x32xf32>
    %519 = arith.addf %516, %518 : vector<16x32xf32>
    %520 = vector.extract_strided_slice %519 {offsets = [0, 0], sizes = [16, 16], strides = [1, 1]} : vector<16x32xf32> to vector<16x16xf32>
    %521 = vector.extract_strided_slice %519 {offsets = [0, 16], sizes = [16, 16], strides = [1, 1]} : vector<16x32xf32> to vector<16x16xf32>
    %cst_161 = arith.constant 5.000000e-01 : f32
    %522 = vector.broadcast %cst_161 : f32 to vector<16x16xf32>
    %523 = arith.mulf %521, %522 : vector<16x16xf32>
    %524 = math.exp %523 : vector<16x16xf32>
    %c0_162 = arith.constant 0 : index
    %c0_163 = arith.constant 0 : index
    %525 = vector.load %arg9[%c0_162, %c0_163] : memref<16x16xf32, #tpu.memory_space<vmem>>, vector<16x16xf32>
    %526 = arith.mulf %524, %525 : vector<16x16xf32>
    %527 = arith.addf %520, %526 : vector<16x16xf32>
    %c0_164 = arith.constant 0 : index
    %c0_165 = arith.constant 0 : index
    %528 = vector.load %arg10[%c0_164, %c0_165] : memref<16x16xf32, #tpu.memory_space<vmem>>, vector<16x16xf32>
    tpu.vector_store %arg10[%c0_164, %c0_165], %527 {strides = array<i32>} : memref<16x16xf32, #tpu.memory_space<vmem>>, vector<16x16xf32>,
    return
  }
}

</mosaic_0001>

<bundles_post_ra>
// kernel: encoder_forward.1
= control target key start
LH: loop header
LB: loop body
LE: loop exit
PB: predicated region body
PF: predicated region fallthrough
CT: control target
= control target key end

     0   :  { %vm49_vm0 = vcmask 1043456   ;;  %vm42_vm1 = vcmask 31744   ;;  %v1700_v6 = vmov 0.0   ;;  %s1701_s26 = smov 64   ;;  %vm80_vm6 = vcmask 261120   ;;  %s1704_s28 = smov 112   ;;  %s2160_s2 = inlined_call_operand.vmem [shape: f32[32,128], index: 2, kind: input, shape index: {}]   ;;  %s2161_s1 = inlined_call_operand.vmem [shape: f32[4,128], index: 1, kind: input, shape index: {}]   ;;  %s2162_s0 = inlined_call_operand.vmem [shape: f32[16,4], index: 0, kind: input, shape index: {}]   ;;  %s2163_s3 = inlined_call_operand.vmem [shape: f32[1,128], index: 3, kind: input, shape index: {}]   ;;  %s2164_s5 = inlined_call_operand.vmem [shape: f32[32,128], index: 5, kind: input, shape index: {}]   ;;  %s2165_s4 = inlined_call_operand.vmem [shape: f32[32,128], index: 4, kind: input, shape index: {}]   ;;  %s2166_s6 = inlined_call_operand.vmem [shape: f32[1,128], index: 6, kind: input, shape index: {}]   ;;  %s2167_s7 = inlined_call_operand.vmem [shape: f32[32,32], index: 7, kind: input, shape index: {}]   ;;  %s2168_s8 = inlined_call_operand.vmem [shape: f32[1,32], index: 8, kind: input, shape index: {}]   ;;  %s2169_s9 = inlined_call_operand.vmem [shape: f32[16,16], index: 9, kind: input, shape index: {}]   ;;  %s2170_s10 = inlined_call_operand.vmem [shape: f32[16,16], index: 10, kind: output, shape index: {}]  }
   0x1   :  { %v1763_v0 = vld [vmem:[%s2160_s2 + $0x18] sm:$0xff]  ;;  %v1768_v1 = vld [vmem:[%s2160_s2 + $0x10] sm:$0xff]  ;;  %v37_v2 = vld [vmem:[%s2161_s1] sm:$0xf]  ;;  %vm241_vm15 = vcmask 254976  }
   0x2   :  { %96 = vmatpush.msra.mxu1 %v1763_v0  ;;  %1510 = vmatpush.msk.msra.mxu0 %vm49_vm0, %v37_v2  ;;  %v35_v3 = vld [vmem:[%s2162_s0] sm:$0xff]  ;;  %v1780_v4 = vld [vmem:[%s2160_s2 + $0x8] sm:$0xff]  ;;  %v1818_v32 = vld [vmem:[%s2164_s5 + $0x18] sm:$0xff] }
   0x3   :  { %1511 = vmatmul.msk.f32.vlgmr.msra.gmra.mxu0 %vm42_vm1, %v35_v3  ;;  %v1788_v5 = vld [vmem:[%s2160_s2] sm:$0xff]  ;;  %v1823_v33 = vld [vmem:[%s2164_s5 + $0x10] sm:$0xff]  ;;  %162 = vmatpush.msra.mxu3 %v1818_v32  ;;  %v1830_v34 = vld [vmem:[%s2164_s5 + $0x8] sm:$0xff] }
   0x4   :  { %97 = vmatpush.msra.mxu1 %v1768_v1  ;;  %430 = vmatpush.msrb.mxu0 %v1763_v0  ;;  %v1803_v7 = vld [vmem:[%s2163_s3] ss:$0 sm:$0xff]  ;;  %s1702_s3 = smov 32   ;;  %v1848_v36 = vld [vmem:[%s2165_s4 + $0x18] sm:$0xff]  ;;  %v1858_v37 = vld [vmem:[%s2165_s4 + $0x10] sm:$0xff] }
   0x5   :  { %333 = vmatpush.msra.mxu2 %v1818_v32  ;;  %163 = vmatpush.msra.mxu3 %v1823_v33  ;;  %v1839_v35 = vld [vmem:[%s2164_s5] sm:$0xff]  ;;  %v1866_v38 = vld [vmem:[%s2165_s4 + $0x8] sm:$0xff] }
   0x6   :  { %98 = vmatpush.msra.mxu1 %v1780_v4  ;;  %431 = vmatpush.msrb.mxu0 %v1768_v1  ;;  %v1874_v39 = vld [vmem:[%s2165_s4] sm:$0xff] }
   0x7   :  { %334 = vmatpush.msra.mxu2 %v1823_v33  ;;  %164 = vmatpush.msra.mxu3 %v1830_v34  ;;  %v1559_v47 = vld [vmem:[%s2166_s6] ss:$0 sm:$0xff] }
   0x8   :  { %99 = vmatpush.msra.mxu1 %v1788_v5  ;;  %432 = vmatpush.msrb.mxu0 %v1780_v4 }
   0x9   :  { %100 = vmatmul.f32.vlgmr.msra.gmra.mxu1 %v1700_v6  ;;  %335 = vmatpush.msra.mxu2 %v1830_v34 }
   0xa   :  { %259 = vmatpush.msrb.mxu1 %v1763_v0  ;;  %433 = vmatpush.msrb.mxu0 %v1788_v5 }
   0xb   :  { %165 = vmatpush.msra.mxu3 %v1839_v35  ;;  %336 = vmatpush.msra.mxu2 %v1839_v35 }
   0xc   :  { %260 = vmatpush.msrb.mxu1 %v1768_v1  ;;  %675 = vmatpush.msra.mxu0 %v1818_v32 }
   0xd   :  { %166 = vmatmul.f32.vlgmr.msra.gmra.mxu3 %v1700_v6  ;;  %530 = vmatpush.msrb.mxu2 %v1848_v36 }
   0xe   :  { %261 = vmatpush.msrb.mxu1 %v1780_v4  ;;  %676 = vmatpush.msra.mxu0 %v1823_v33 }
   0xf   :  { %187 = vmatpush.msrb.mxu3 %v1848_v36  ;;  %531 = vmatpush.msrb.mxu2 %v1858_v37 }
  0x10   :  { %262 = vmatpush.msrb.mxu1 %v1788_v5  ;;  %677 = vmatpush.msra.mxu0 %v1830_v34 }
  0x11   :  { %188 = vmatpush.msrb.mxu3 %v1858_v37  ;;  %532 = vmatpush.msrb.mxu2 %v1866_v38 }
  0x12   :  { %504 = vmatpush.msra.mxu1 %v1818_v32  ;;  %678 = vmatpush.msra.mxu0 %v1839_v35 }
  0x13   :  { %189 = vmatpush.msrb.mxu3 %v1866_v38  ;;  %533 = vmatpush.msrb.mxu2 %v1874_v39 }
  0x14   :  { %505 = vmatpush.msra.mxu1 %v1823_v33 }
  0x15   :  { %190 = vmatpush.msrb.mxu3 %v1874_v39 }
  0x16   :  { %506 = vmatpush.msra.mxu1 %v1830_v34 }
  0x17   :  { %359 = vmatpush.msra.mxu3 %v1848_v36 }
  0x18   :  { %507 = vmatpush.msra.mxu1 %v1839_v35 }
  0x19   :  { %360 = vmatpush.msra.mxu3 %v1858_v37 }
  0x1b   :  { %361 = vmatpush.msra.mxu3 %v1866_v38 }
  0x1d   :  { %362 = vmatpush.msra.mxu3 %v1874_v39 }
  0x80   :  { %v70_v8 = vpop.f32.mrf.mxu0 }
  0x81   :  { %v1806_v9 = vadd.f32 %v1803_v7, %v70_v8 }
  0x86   :  { %v101_v10 = vpop.f32.mrf.mxu1 }
  0x87   :  { %v104_v11 = vadd.f32 %v101_v10, %v1806_v9 }
  0x89   :  { %1568 = vtanh.f32 %v104_v11  ;;  %v1513_v13 = vmul.f32 -1.442695, %v104_v11 }
  0x8b   :  { %1570 = vpow2.f32 %v1513_v13 }
  0x8f   :  { %v1569_v12 = vpop.eup %1568 }
  0x90   :  { %127 = vrot.lane.b32.xlu0 %v1569_v12, %s1701_s26  ;;  %v167_v43 = vpop.f32.mrf.mxu3 }
  0x91   :  { %v1571_v14 = vpop.eup %1570 }
  0x92   :  { %v108_v15 = vadd.f32 1.0, %v1571_v14 }
  0x94   :  { %1572 = vrcp.f32 %v108_v15  ;;  %v120_v21 = vand.u32 2147483648, %v108_v15  ;;  %vm114_vm3 = vweird.f32 %v108_v15  ;;  %v118_v22 = vand.u32 2147483647, %v108_v15 }
  0x96   :  { %v121_v24 = vor.u32 1.1754944e-38, %v120_v21  ;;  %vm119_vm5 = vcmp.eq.f32.partialorder %v118_v22, 8.507059e+37 }
  0x9a   :  { %v1573_v16 = vpop.eup %1572 }
  0x9b   :  { %v110_v17 = vmul.f32 %v1573_v16, %v108_v15  ;;  %vm115_vm2 = vweird.f32 %v1573_v16 }
  0x9c   :  { %vm116_vm4 = vmor %vm114_vm3, %vm115_vm2 }
  0x9d   :  { %v111_v18 = vsub.f32 1.0, %v110_v17 }
  0x9f   :  { %v112_v19 = vmul.f32 %v1573_v16, %v111_v18 }
  0xa1   :  { %v113_v20 = vadd.f32 %v1573_v16, %v112_v19 }
  0xa3   :  { %v117_v23 = vsel %vm116_vm4, %v1573_v16, %v113_v20 }
  0xa4   :  { %v122_v26 = vsel %vm119_vm5, %v121_v24, %v117_v23 }
  0xa5   :  { %v125_v28 = vmul.f32 0.0, %v122_v26 }
 0x102   :  { %v128_v25 = vpop.permute.xlu0 %127 }
 0x103   :  { %v130_v27 = vmul.f32 %v128_v25, %v122_v26 }
 0x105   :  { %132 = vrot.lane.b32.xlu0 %v130_v27, %s1702_s3 }
 0x177   :  { %v133_v29 = vpop.permute.xlu0 %132 }
 0x178   :  { %v1811_v30 = vadd.f32 %v133_v29, %v125_v28 }
 0x17a   :  { %1574 = vtanh.f32 %v1811_v30  ;;  %v292_v25 = vrot.slane %v1811_v30, 6 }
 0x180   :  { %v1575_v31 = vpop.eup %1574 }
 0x181   :  { %138 = vrot.lane.b32.xlu1 %v1575_v31, %s1701_s26 }
 0x1f3   :  { %v139_v40 = vpop.permute.xlu1 %138 }
 0x1f4   :  { %v141_v41 = vmul.f32 %v139_v40, %v122_v26 }
 0x1f6   :  { %171 = vrot.lane.b32.xlu1 %v141_v41, %s1702_s3 }
 0x268   :  { %v172_v42 = vpop.permute.xlu1 %171 }
 0x269   :  { %1514 = vmatmul.msk.f32.vlgmr.msrb.gmra.mxu3 %vm80_vm6, %v172_v42  ;;  %1516 = vmatmul.msk.f32.vlgmr.msrb.gmra.mxu1 %vm80_vm6, %v172_v42 }
 0x26a   :  { %601 = vmatpush.msrb.mxu3 %v1763_v0  ;;  %701 = vmatpush.msrb.mxu1 %v1848_v36 }
 0x26c   :  { %602 = vmatpush.msrb.mxu3 %v1768_v1  ;;  %702 = vmatpush.msrb.mxu1 %v1858_v37 }
 0x26e   :  { %603 = vmatpush.msrb.mxu3 %v1780_v4  ;;  %703 = vmatpush.msrb.mxu1 %v1866_v38 }
 0x270   :  { %604 = vmatpush.msrb.mxu3 %v1788_v5  ;;  %704 = vmatpush.msrb.mxu1 %v1874_v39 }
 0x2e6   :  { %v264_v44 = vpop.f32.mrf.mxu1 }
 0x2e7   :  { %v268_v45 = vrot.slane %v264_v44, 6 }
 0x2e9   :  { %v270_v46 = vadd.f32 %v268_v45, %v1806_v9  ;;  %v36_v45 = vld [vmem:[%s2162_s0 + $0x8] sm:$0xff]  ;;  %s1703_s0 = smov 16  }
 0x2ea   :  { %1512 = vmatmul.msk.f32.gmra.mxu0 %vm42_vm1, %v36_v45 }
 0x2eb   :  { %1576 = vtanh.f32 %v270_v46  ;;  %v1517_v53 = vmul.f32 -1.442695, %v270_v46 }
 0x2ec   :  { %v192_v48 = vpop.f32.mrf.mxu3 }
 0x2ed   :  { %v193_v49 = vadd.f32 %v192_v48, %v167_v43 }
 0x2ef   :  { %v199_v50 = vadd.f32 %v1559_v47, %v193_v49 }
 0x2f1   :  { %v1577_v51 = vpop.eup %1576  ;;  %1578 = vtanh.f32 %v199_v50  ;;  %v1515_v54 = vmul.f32 -1.442695, %v199_v50 }
 0x2f2   :  { %296 = vrot.lane.b32.xlu2 %v1577_v51, %s1701_s26  ;;  %1580 = vpow2.f32 %v1517_v53 }
 0x2f3   :  { %1582 = vpow2.f32 %v1515_v54 }
 0x2f7   :  { %v1579_v52 = vpop.eup %1578 }
 0x2f8   :  { %v1581_v55 = vpop.eup %1580 }
 0x2f9   :  { %v274_v56 = vadd.f32 1.0, %v1581_v55  ;;  %v1583_v57 = vpop.eup %1582 }
 0x2fa   :  { %222 = vrot.lane.b32.xlu2 %v1579_v52, %s1701_s26  ;;  %v203_v58 = vadd.f32 1.0, %v1583_v57  ;;  %v1560_v52 = vld [vmem:[%s2166_s6] ss:$0 sm:$0xff] }
 0x2fb   :  { %1584 = vrcp.f32 %v274_v56  ;;  %v286_v8 = vand.u32 2147483648, %v274_v56  ;;  %vm280_vm8 = vweird.f32 %v274_v56  ;;  %v284_v10 = vand.u32 2147483647, %v274_v56 }
 0x2fc   :  { %1586 = vrcp.f32 %v203_v58  ;;  %v215_v18 = vand.u32 2147483648, %v203_v58  ;;  %vm209_vm12 = vweird.f32 %v203_v58  ;;  %v213_v19 = vand.u32 2147483647, %v203_v58 }
 0x2fd   :  { %v287_v13 = vor.u32 1.1754944e-38, %v286_v8  ;;  %vm285_vm10 = vcmp.eq.f32.partialorder %v284_v10, 8.507059e+37 }
 0x2fe   :  { %v216_v21 = vor.u32 1.1754944e-38, %v215_v18  ;;  %vm214_vm14 = vcmp.eq.f32.partialorder %v213_v19, 8.507059e+37 }
 0x301   :  { %v1585_v59 = vpop.eup %1584 }
 0x302   :  { %v276_v60 = vmul.f32 %v1585_v59, %v274_v56  ;;  %v1587_v62 = vpop.eup %1586  ;;  %vm281_vm7 = vweird.f32 %v1585_v59 }
 0x303   :  { %v205_v2 = vmul.f32 %v1587_v62, %v203_v58  ;;  %vm282_vm9 = vmor %vm280_vm8, %vm281_vm7  ;;  %vm210_vm11 = vweird.f32 %v1587_v62 }
 0x304   :  { %v277_v61 = vsub.f32 1.0, %v276_v60  ;;  %vm211_vm13 = vmor %vm209_vm12, %vm210_vm11 }
 0x305   :  { %v206_v6 = vsub.f32 1.0, %v205_v2 }
 0x306   :  { %v278_v63 = vmul.f32 %v1585_v59, %v277_v61 }
 0x307   :  { %v207_v12 = vmul.f32 %v1587_v62, %v206_v6 }
 0x308   :  { %v279_v3 = vadd.f32 %v1585_v59, %v278_v63 }
 0x309   :  { %v208_v17 = vadd.f32 %v1587_v62, %v207_v12 }
 0x30a   :  { %v283_v11 = vsel %vm282_vm9, %v1585_v59, %v279_v3 }
 0x30b   :  { %v288_v15 = vsel %vm285_vm10, %v287_v13, %v283_v11  ;;  %v212_v20 = vsel %vm211_vm13, %v1587_v62, %v208_v17 }
 0x30c   :  { %v217_v23 = vsel %vm214_vm14, %v216_v21, %v212_v20  ;;  %v294_v26 = vmul.f32 %v292_v25, %v288_v15 }
 0x30d   :  { %v220_v29 = vmul.f32 0.0, %v217_v23 }
 0x34c   :  { %v297_v14 = vpop.permute.xlu2 %296 }
 0x34d   :  { %v299_v16 = vmul.f32 %v297_v14, %v288_v15 }
 0x34f   :  { %301 = vrot.lane.b32.xlu0 %v299_v16, %s1702_s3 }
 0x354   :  { %v223_v22 = vpop.permute.xlu2 %222 }
 0x355   :  { %v225_v24 = vmul.f32 %v223_v22, %v217_v23 }
 0x357   :  { %227 = vrot.lane.b32.xlu1 %v225_v24, %s1702_s3 }
 0x3c1   :  { %v302_v27 = vpop.permute.xlu0 %301 }
 0x3c2   :  { %v1904_v28 = vadd.f32 %v302_v27, %v294_v26 }
 0x3c4   :  { %1588 = vtanh.f32 %v1904_v28 }
 0x3c9   :  { %v228_v31 = vpop.permute.xlu1 %227 }
 0x3ca   :  { %v1589_v40 = vpop.eup %1588  ;;  %v1907_v41 = vadd.f32 %v228_v31, %v220_v29  ;;  %v463_v31 = vrot.slane %v1904_v28, 6 }
 0x3cb   :  { %307 = vrot.lane.b32.xlu2 %v1589_v40, %s1701_s26 }
 0x3cc   :  { %1590 = vtanh.f32 %v1907_v41 }
 0x3d2   :  { %v1591_v42 = vpop.eup %1590 }
 0x3d3   :  { %233 = vrot.lane.b32.xlu0 %v1591_v42, %s1701_s26 }
 0x425   :  { %v308_v43 = vpop.permute.xlu2 %307 }
 0x426   :  { %v310_v30 = vmul.f32 %v308_v43, %v288_v15 }
 0x428   :  { %v342_v44 = vrot.slane %v310_v30, 2 }
 0x42a   :  { %343 = vrot.lane.b32.xlu1 %v342_v44, %s1702_s3 }
 0x445   :  { %v234_v46 = vpop.permute.xlu0 %233 }
 0x446   :  { %v236_v47 = vmul.f32 %v234_v46, %v217_v23 }
 0x448   :  { %238 = vrot.lane.b32.xlu2 %v236_v47, %s1702_s3 }
 0x49c   :  { %v344_v48 = vpop.permute.xlu1 %343 }
 0x49d   :  { %1519 = vmatmul.msk.f32.vlgmr.msra.gmra.mxu3 %vm80_vm6, %v344_v48  ;;  %1521 = vmatmul.msk.f32.vlgmr.msrb.gmra.mxu0 %vm80_vm6, %v344_v48 }
 0x49e   :  { %868 = vmatpush.msrb.mxu0 %v1848_v36  ;;  %843 = vmatpush.msra.mxu3 %v1818_v32  ;;  %v1934_v32 = vpop.f32.mrf.mxu0 }
 0x4a0   :  { %869 = vmatpush.msrb.mxu0 %v1858_v37  ;;  %844 = vmatpush.msra.mxu3 %v1823_v33 }
 0x4a2   :  { %v239_v49 = vpop.permute.xlu2 %238  ;;  %870 = vmatpush.msrb.mxu0 %v1866_v38  ;;  %845 = vmatpush.msra.mxu3 %v1830_v34 }
 0x4a3   :  { %242 = vst.msk [vmem:[#allocation2] sm:$0x3] %vm241_vm15, %v239_v49  ;;  %1518 = vmatmul.msk.f32.vlgmr.msra.gmra.mxu2 %vm80_vm6, %v239_v49 }
 0x4a4   :  { %772 = vmatpush.msra.mxu2 %v1763_v0  ;;  %871 = vmatpush.msrb.mxu0 %v1874_v39 }
 0x4a5   :  { %846 = vmatpush.msra.mxu3 %v1839_v35 }
 0x4a6   :  { %773 = vmatpush.msra.mxu2 %v1768_v1 }
 0x4a8   :  { %774 = vmatpush.msra.mxu2 %v1780_v4 }
 0x4aa   :  { %775 = vmatpush.msra.mxu2 %v1788_v5 }
 0x51a   :  { %v435_v33 = vpop.f32.mrf.mxu0 }
 0x51b   :  { %v439_v34 = vrot.slane %v435_v33, 4 }
 0x51d   :  { %v441_v50 = vadd.f32 %v439_v34, %v1806_v9 }
 0x51f   :  { %1592 = vtanh.f32 %v441_v50  ;;  %v1522_v57 = vmul.f32 -1.442695, %v441_v50 }
 0x520   :  { %v364_v53 = vpop.f32.mrf.mxu3 }
 0x525   :  { %v1593_v51 = vpop.eup %1592 }
 0x526   :  { %467 = vrot.lane.b32.xlu0 %v1593_v51, %s1701_s26  ;;  %v338_v35 = vpop.f32.mrf.mxu2 }
 0x527   :  { %v365_v54 = vadd.f32 %v364_v53, %v338_v35 }
 0x529   :  { %v371_v55 = vadd.f32 %v1560_v52, %v365_v54 }
 0x52b   :  { %1594 = vtanh.f32 %v371_v55  ;;  %v1520_v59 = vmul.f32 -1.442695, %v371_v55 }
 0x52c   :  { %1596 = vpow2.f32 %v1522_v57 }
 0x52d   :  { %1598 = vpow2.f32 %v1520_v59 }
 0x531   :  { %v1595_v56 = vpop.eup %1594 }
 0x532   :  { %394 = vrot.lane.b32.xlu1 %v1595_v56, %s1701_s26  ;;  %v1597_v58 = vpop.eup %1596 }
 0x533   :  { %v445_v60 = vadd.f32 1.0, %v1597_v58  ;;  %v1599_v61 = vpop.eup %1598 }
 0x534   :  { %v375_v63 = vadd.f32 1.0, %v1599_v61 }
 0x535   :  { %1600 = vrcp.f32 %v445_v60  ;;  %v457_v12 = vand.u32 2147483648, %v445_v60  ;;  %vm451_vm1 = vweird.f32 %v445_v60  ;;  %v455_v13 = vand.u32 2147483647, %v445_v60 }
 0x536   :  { %1602 = vrcp.f32 %v375_v63  ;;  %v387_v22 = vand.u32 2147483648, %v375_v63  ;;  %vm381_vm5 = vweird.f32 %v375_v63  ;;  %v385_v23 = vand.u32 2147483647, %v375_v63 }
 0x537   :  { %v458_v16 = vor.u32 1.1754944e-38, %v457_v12  ;;  %vm456_vm3 = vcmp.eq.f32.partialorder %v455_v13, 8.507059e+37 }
 0x538   :  { %v388_v25 = vor.u32 1.1754944e-38, %v387_v22  ;;  %vm386_vm8 = vcmp.eq.f32.partialorder %v385_v23, 8.507059e+37 }
 0x53b   :  { %v1601_v62 = vpop.eup %1600 }
 0x53c   :  { %v447_v2 = vmul.f32 %v1601_v62, %v445_v60  ;;  %v1603_v8 = vpop.eup %1602  ;;  %vm452_vm0 = vweird.f32 %v1601_v62 }
 0x53d   :  { %v377_v11 = vmul.f32 %v1603_v8, %v375_v63  ;;  %vm453_vm2 = vmor %vm451_vm1, %vm452_vm0  ;;  %vm382_vm4 = vweird.f32 %v1603_v8 }
 0x53e   :  { %v448_v3 = vsub.f32 1.0, %v447_v2  ;;  %vm383_vm7 = vmor %vm381_vm5, %vm382_vm4 }
 0x53f   :  { %v378_v15 = vsub.f32 1.0, %v377_v11 }
 0x540   :  { %v449_v6 = vmul.f32 %v1601_v62, %v448_v3 }
 0x541   :  { %v379_v20 = vmul.f32 %v1603_v8, %v378_v15 }
 0x542   :  { %v450_v10 = vadd.f32 %v1601_v62, %v449_v6 }
 0x543   :  { %v380_v21 = vadd.f32 %v1603_v8, %v379_v20 }
 0x544   :  { %v454_v14 = vsel %vm453_vm2, %v1601_v62, %v450_v10 }
 0x545   :  { %v459_v17 = vsel %vm456_vm3, %v458_v16, %v454_v14  ;;  %v384_v24 = vsel %vm383_vm7, %v1603_v8, %v380_v21 }
 0x546   :  { %v389_v27 = vsel %vm386_vm8, %v388_v25, %v384_v24  ;;  %v465_v40 = vmul.f32 %v463_v31, %v459_v17 }
 0x547   :  { %v392_v44 = vmul.f32 %v389_v27, %v1907_v41 }
 0x598   :  { %v468_v18 = vpop.permute.xlu0 %467 }
 0x599   :  { %v470_v19 = vmul.f32 %v468_v18, %v459_v17 }
 0x59b   :  { %472 = vrot.lane.b32.xlu2 %v470_v19, %s1702_s3 }
 0x5a4   :  { %v395_v26 = vpop.permute.xlu1 %394 }
 0x5a5   :  { %v397_v29 = vmul.f32 %v395_v26, %v389_v27 }
 0x5a7   :  { %399 = vrot.lane.b32.xlu0 %v397_v29, %s1702_s3 }
 0x5f5   :  { %v473_v42 = vpop.permute.xlu2 %472 }
 0x5f6   :  { %v1945_v43 = vadd.f32 %v473_v42, %v465_v40 }
 0x5f8   :  { %1604 = vtanh.f32 %v1945_v43  ;;  %v634_v23 = vrot.slane %v1945_v43, 6 }
 0x5fe   :  { %v1605_v30 = vpop.eup %1604 }
 0x5ff   :  { %478 = vrot.lane.b32.xlu1 %v1605_v30, %s1701_s26 }
 0x619   :  { %v400_v45 = vpop.permute.xlu0 %399 }
 0x61a   :  { %v1950_v46 = vadd.f32 %v400_v45, %v392_v44 }
 0x61c   :  { %1606 = vtanh.f32 %v1950_v46 }
 0x622   :  { %v1607_v47 = vpop.eup %1606 }
 0x623   :  { %405 = vrot.lane.b32.xlu2 %v1607_v47, %s1701_s26 }
 0x671   :  { %v479_v28 = vpop.permute.xlu1 %478 }
 0x672   :  { %v481_v48 = vmul.f32 %v479_v28, %v459_v17 }
 0x674   :  { %v513_v49 = vrot.slane %v481_v48, 4  ;;  %v1994_v48 = vadd.f32 %v1803_v7, %v1934_v32 }
 0x676   :  { %514 = vrot.lane.b32.xlu0 %v513_v49, %s1702_s3 }
 0x67d   :  { %v406_v33 = vpop.permute.xlu2 %405 }
 0x67e   :  { %v408_v34 = vmul.f32 %v406_v33, %v389_v27 }
 0x680   :  { %410 = vrot.lane.b32.xlu1 %v408_v34, %s1702_s3 }
 0x6e8   :  { %v515_v50 = vpop.permute.xlu0 %514 }
 0x6e9   :  { %1524 = vmatmul.msk.f32.vlgmr.msrb.gmra.mxu2 %vm80_vm6, %v515_v50  ;;  %1526 = vmatmul.msk.f32.vlgmr.msrb.gmra.mxu3 %vm80_vm6, %v515_v50  ;;  %v1562_v50 = vld [vmem:[%s2166_s6] ss:$0 sm:$0xff] }
 0x6ea   :  { %1039 = vmatpush.msrb.mxu3 %v1848_v36 }
 0x6ec   :  { %1040 = vmatpush.msrb.mxu3 %v1858_v37 }
 0x6ee   :  { %1041 = vmatpush.msrb.mxu3 %v1866_v38  ;;  %v1561_v38 = vld [vmem:[%s2166_s6] ss:$0 sm:$0xff] }
 0x6f0   :  { %1042 = vmatpush.msrb.mxu3 %v1874_v39 }
 0x6f2   :  { %v411_v41 = vpop.permute.xlu1 %410 }
 0x6f3   :  { %413 = vst.msk [vmem:[#allocation2 + $0x2] sm:$0x3] %vm241_vm15, %v411_v41  ;;  %1523 = vmatmul.msk.f32.vlgmr.msra.gmra.mxu1 %vm80_vm6, %v411_v41 }
 0x6f4   :  { %939 = vmatpush.msra.mxu1 %v1763_v0 }
 0x6f6   :  { %940 = vmatpush.msra.mxu1 %v1768_v1 }
 0x6f8   :  { %941 = vmatpush.msra.mxu1 %v1780_v4 }
 0x6fa   :  { %942 = vmatpush.msra.mxu1 %v1788_v5 }
 0x76c   :  { %v606_v36 = vpop.f32.mrf.mxu3  ;;  %v535_v39 = vpop.f32.mrf.mxu2 }
 0x76d   :  { %v610_v51 = vrot.slane %v606_v36, 2 }
 0x76f   :  { %v612_v37 = vadd.f32 %v610_v51, %v1806_v9 }
 0x770   :  { %v509_v52 = vpop.f32.mrf.mxu1 }
 0x771   :  { %1608 = vtanh.f32 %v612_v37  ;;  %v536_v53 = vadd.f32 %v535_v39, %v509_v52  ;;  %v1527_v4 = vmul.f32 -1.442695, %v612_v37 }
 0x773   :  { %v542_v35 = vadd.f32 %v1561_v38, %v536_v53 }
 0x775   :  { %1610 = vtanh.f32 %v542_v35  ;;  %v1525_v56 = vmul.f32 -1.442695, %v542_v35 }
 0x776   :  { %1612 = vpow2.f32 %v1527_v4 }
 0x777   :  { %v1609_v0 = vpop.eup %1608 }
 0x778   :  { %638 = vrot.lane.b32.xlu2 %v1609_v0, %s1701_s26 }
 0x77b   :  { %v1611_v1 = vpop.eup %1610 }
 0x77c   :  { %565 = vrot.lane.b32.xlu0 %v1611_v1, %s1701_s26  ;;  %v1613_v5 = vpop.eup %1612 }
 0x77d   :  { %v616_v9 = vadd.f32 1.0, %v1613_v5 }
 0x77f   :  { %1614 = vrcp.f32 %v616_v9  ;;  %v628_v61 = vand.u32 2147483648, %v616_v9  ;;  %vm622_vm10 = vweird.f32 %v616_v9  ;;  %v626_v62 = vand.u32 2147483647, %v616_v9 }
 0x780   :  { %1616 = vpow2.f32 %v1525_v56 }
 0x781   :  { %v629_v3 = vor.u32 1.1754944e-38, %v628_v61  ;;  %vm627_vm12 = vcmp.eq.f32.partialorder %v626_v62, 8.507059e+37 }
 0x785   :  { %v1615_v54 = vpop.eup %1614 }
 0x786   :  { %v618_v55 = vmul.f32 %v1615_v54, %v616_v9  ;;  %v1617_v59 = vpop.eup %1616  ;;  %vm623_vm9 = vweird.f32 %v1615_v54 }
 0x787   :  { %v546_v63 = vadd.f32 1.0, %v1617_v59  ;;  %vm624_vm11 = vmor %vm622_vm10, %vm623_vm9 }
 0x788   :  { %v619_v57 = vsub.f32 1.0, %v618_v55 }
 0x789   :  { %1618 = vrcp.f32 %v546_v63  ;;  %v558_v16 = vand.u32 2147483648, %v546_v63  ;;  %vm552_vm14 = vweird.f32 %v546_v63  ;;  %v556_v17 = vand.u32 2147483647, %v546_v63 }
 0x78a   :  { %v620_v58 = vmul.f32 %v1615_v54, %v619_v57 }
 0x78b   :  { %v559_v19 = vor.u32 1.1754944e-38, %v558_v16  ;;  %vm557_vm1 = vcmp.eq.f32.partialorder %v556_v17, 8.507059e+37 }
 0x78c   :  { %v621_v60 = vadd.f32 %v1615_v54, %v620_v58 }
 0x78e   :  { %v625_v2 = vsel %vm624_vm11, %v1615_v54, %v621_v60 }
 0x78f   :  { %v630_v8 = vsel %vm627_vm12, %v629_v3, %v625_v2  ;;  %v1619_v11 = vpop.eup %1618 }
 0x790   :  { %v548_v12 = vmul.f32 %v1619_v11, %v546_v63  ;;  %vm553_vm13 = vweird.f32 %v1619_v11  ;;  %v636_v24 = vmul.f32 %v634_v23, %v630_v8 }
 0x791   :  { %vm554_vm0 = vmor %vm552_vm14, %vm553_vm13 }
 0x792   :  { %v549_v13 = vsub.f32 1.0, %v548_v12 }
 0x794   :  { %v550_v14 = vmul.f32 %v1619_v11, %v549_v13 }
 0x796   :  { %v551_v15 = vadd.f32 %v1619_v11, %v550_v14 }
 0x798   :  { %v555_v18 = vsel %vm554_vm0, %v1619_v11, %v551_v15 }
 0x799   :  { %v560_v21 = vsel %vm557_vm1, %v559_v19, %v555_v18 }
 0x79a   :  { %v563_v27 = vmul.f32 %v560_v21, %v1950_v46 }
 0x7d2   :  { %v639_v6 = vpop.permute.xlu2 %638 }
 0x7d3   :  { %v641_v10 = vmul.f32 %v639_v6, %v630_v8 }
 0x7d5   :  { %643 = vrot.lane.b32.xlu1 %v641_v10, %s1702_s3 }
 0x7ee   :  { %v566_v20 = vpop.permute.xlu0 %565 }
 0x7ef   :  { %v568_v22 = vmul.f32 %v566_v20, %v560_v21 }
 0x7f1   :  { %570 = vrot.lane.b32.xlu2 %v568_v22, %s1702_s3 }
 0x847   :  { %v644_v25 = vpop.permute.xlu1 %643 }
 0x848   :  { %v1977_v26 = vadd.f32 %v644_v25, %v636_v24 }
 0x84a   :  { %1620 = vtanh.f32 %v1977_v26  ;;  %v802_v15 = vrot.slane %v1977_v26, 6 }
 0x84b   :  { %v571_v29 = vpop.permute.xlu2 %570 }
 0x84c   :  { %v1981_v31 = vadd.f32 %v571_v29, %v563_v27 }
 0x84e   :  { %1622 = vtanh.f32 %v1981_v31 }
 0x850   :  { %v1621_v40 = vpop.eup %1620 }
 0x851   :  { %649 = vrot.lane.b32.xlu0 %v1621_v40, %s1701_s26 }
 0x854   :  { %v1623_v42 = vpop.eup %1622 }
 0x855   :  { %576 = vrot.lane.b32.xlu1 %v1623_v42, %s1701_s26 }
 0x8c3   :  { %v650_v43 = vpop.permute.xlu0 %649 }
 0x8c4   :  { %v652_v30 = vmul.f32 %v650_v43, %v630_v8 }
 0x8c6   :  { %v684_v44 = vrot.slane %v652_v30, 6 }
 0x8c7   :  { %v577_v45 = vpop.permute.xlu1 %576 }
 0x8c8   :  { %v579_v47 = vmul.f32 %v577_v45, %v560_v21  ;;  %685 = vrot.lane.b32.xlu2 %v684_v44, %s1702_s3  ;;  %v1563_v44 = vld [vmem:[%s2166_s6] ss:$0 sm:$0xff] }
 0x8ca   :  { %581 = vrot.lane.b32.xlu0 %v579_v47, %s1702_s3 }
 0x922   :  { %v686_v46 = vpop.permute.xlu2 %685 }
 0x923   :  { %1529 = vmatmul.msk.f32.vlgmr.msrb.gmra.mxu1 %vm80_vm6, %v686_v46  ;;  %1531 = vmatmul.msk.f32.vlgmr.msra.gmra.mxu2 %vm80_vm6, %v686_v46 }
 0x93c   :  { %v582_v28 = vpop.permute.xlu0 %581 }
 0x93d   :  { %584 = vst.msk [vmem:[#allocation2 + $0x4] sm:$0x3] %vm241_vm15, %v582_v28  ;;  %1528 = vmatmul.msk.f32.vlgmr.msra.gmra.mxu0 %vm80_vm6, %v582_v28 }
 0x9a0   :  { %v706_v41 = vpop.f32.mrf.mxu1 }
 0x9a6   :  { %v777_v49 = vpop.f32.mrf.mxu2 }
 0x9a7   :  { %v780_v33 = vadd.f32 %v777_v49, %v1994_v48 }
 0x9a9   :  { %1624 = vtanh.f32 %v780_v33  ;;  %v1532_v7 = vmul.f32 -1.442695, %v780_v33 }
 0x9af   :  { %v1625_v34 = vpop.eup %1624 }
 0x9b0   :  { %806 = vrot.lane.b32.xlu2 %v1625_v34, %s1701_s26 }
 0x9ba   :  { %v680_v36 = vpop.f32.mrf.mxu0 }
 0x9bb   :  { %v707_v51 = vadd.f32 %v706_v41, %v680_v36 }
 0x9bd   :  { %v713_v37 = vadd.f32 %v1562_v50, %v707_v51 }
 0x9bf   :  { %1626 = vtanh.f32 %v713_v37  ;;  %v1530_v57 = vmul.f32 -1.442695, %v713_v37 }
 0x9c0   :  { %1628 = vpow2.f32 %v1532_v7 }
 0x9c5   :  { %v1627_v38 = vpop.eup %1626 }
 0x9c6   :  { %736 = vrot.lane.b32.xlu1 %v1627_v38, %s1701_s26  ;;  %v1629_v32 = vpop.eup %1628 }
 0x9c7   :  { %v784_v39 = vadd.f32 1.0, %v1629_v32 }
 0x9c9   :  { %1630 = vrcp.f32 %v784_v39  ;;  %v796_v4 = vand.u32 2147483648, %v784_v39  ;;  %vm790_vm3 = vweird.f32 %v784_v39  ;;  %v794_v5 = vand.u32 2147483647, %v784_v39 }
 0x9ca   :  { %1632 = vpow2.f32 %v1530_v57 }
 0x9cb   :  { %v797_v54 = vor.u32 1.1754944e-38, %v796_v4  ;;  %vm795_vm5 = vcmp.eq.f32.partialorder %v794_v5, 8.507059e+37 }
 0x9cf   :  { %v1631_v52 = vpop.eup %1630 }
 0x9d0   :  { %v786_v53 = vmul.f32 %v1631_v52, %v784_v39  ;;  %vm791_vm2 = vweird.f32 %v1631_v52  ;;  %v1633_v59 = vpop.eup %1632 }
 0x9d1   :  { %vm792_vm4 = vmor %vm790_vm3, %vm791_vm2  ;;  %v717_v60 = vadd.f32 1.0, %v1633_v59 }
 0x9d2   :  { %v787_v35 = vsub.f32 1.0, %v786_v53 }
 0x9d3   :  { %1634 = vrcp.f32 %v717_v60  ;;  %v729_v6 = vand.u32 2147483648, %v717_v60  ;;  %vm723_vm8 = vweird.f32 %v717_v60  ;;  %v727_v8 = vand.u32 2147483647, %v717_v60 }
 0x9d4   :  { %v788_v0 = vmul.f32 %v1631_v52, %v787_v35 }
 0x9d5   :  { %v730_v11 = vor.u32 1.1754944e-38, %v729_v6  ;;  %vm728_vm10 = vcmp.eq.f32.partialorder %v727_v8, 8.507059e+37 }
 0x9d6   :  { %v789_v1 = vadd.f32 %v1631_v52, %v788_v0 }
 0x9d8   :  { %v793_v9 = vsel %vm792_vm4, %v1631_v52, %v789_v1 }
 0x9d9   :  { %v798_v56 = vsel %vm795_vm5, %v797_v54, %v793_v9  ;;  %v1635_v61 = vpop.eup %1634 }
 0x9da   :  { %v719_v62 = vmul.f32 %v1635_v61, %v717_v60  ;;  %vm724_vm7 = vweird.f32 %v1635_v61  ;;  %v804_v16 = vmul.f32 %v802_v15, %v798_v56 }
 0x9db   :  { %vm725_vm9 = vmor %vm723_vm8, %vm724_vm7 }
 0x9dc   :  { %v720_v63 = vsub.f32 1.0, %v719_v62 }
 0x9de   :  { %v721_v2 = vmul.f32 %v1635_v61, %v720_v63 }
 0x9e0   :  { %v722_v3 = vadd.f32 %v1635_v61, %v721_v2 }
 0x9e2   :  { %v726_v10 = vsel %vm725_vm9, %v1635_v61, %v722_v3 }
 0x9e3   :  { %v731_v13 = vsel %vm728_vm10, %v730_v11, %v726_v10 }
 0x9e4   :  { %v734_v20 = vmul.f32 %v731_v13, %v1981_v31 }
 0xa0a   :  { %v807_v55 = vpop.permute.xlu2 %806 }
 0xa0b   :  { %v809_v58 = vmul.f32 %v807_v55, %v798_v56 }
 0xa0d   :  { %811 = vrot.lane.b32.xlu1 %v809_v58, %s1702_s3 }
 0xa38   :  { %v737_v12 = vpop.permute.xlu1 %736 }
 0xa39   :  { %v739_v14 = vmul.f32 %v737_v12, %v731_v13 }
 0xa3b   :  { %741 = vrot.lane.b32.xlu0 %v739_v14, %s1702_s3 }
 0xa7f   :  { %v812_v17 = vpop.permute.xlu1 %811 }
 0xa80   :  { %v2005_v18 = vadd.f32 %v812_v17, %v804_v16 }
 0xa82   :  { %1636 = vtanh.f32 %v2005_v18  ;;  %v972_v3 = vrot.slane %v2005_v18, 6 }
 0xa88   :  { %v1637_v19 = vpop.eup %1636 }
 0xa89   :  { %817 = vrot.lane.b32.xlu0 %v1637_v19, %s1701_s26  ;;  %v1097_v19 = vld [vmem:[%s2160_s2 + $0x18] sm:$0xff] }
 0xa8a   :  { %1110 = vmatpush.msra.mxu0 %v1097_v19 }
 0xaad   :  { %v742_v21 = vpop.permute.xlu0 %741 }
 0xaae   :  { %v2010_v22 = vadd.f32 %v742_v21, %v734_v20  ;;  %v1096_v20 = vld [vmem:[%s2160_s2 + $0x10] sm:$0xff]  ;;  %v1095_v21 = vld [vmem:[%s2160_s2 + $0x8] sm:$0xff] }
 0xaaf   :  { %1111 = vmatpush.msra.mxu0 %v1096_v20 }
 0xab0   :  { %1638 = vtanh.f32 %v2010_v22 }
 0xab1   :  { %1112 = vmatpush.msra.mxu0 %v1095_v21 }
 0xab6   :  { %v1639_v23 = vpop.eup %1638 }
 0xab7   :  { %747 = vrot.lane.b32.xlu2 %v1639_v23, %s1701_s26 }
 0xafb   :  { %v818_v24 = vpop.permute.xlu0 %817 }
 0xafc   :  { %v820_v25 = vmul.f32 %v818_v24, %v798_v56 }
 0xafe   :  { %852 = vrot.lane.b32.xlu2 %v820_v25, %s1702_s3  ;;  %v998_v25 = vld [vmem:[%s2164_s5 + $0x18] sm:$0xff] }
 0xaff   :  { %1013 = vmatpush.msrb.mxu2 %v998_v25  ;;  %1184 = vmatpush.msrb.mxu1 %v998_v25 }
 0xb11   :  { %v748_v26 = vpop.permute.xlu2 %747 }
 0xb12   :  { %v750_v27 = vmul.f32 %v748_v26, %v731_v13  ;;  %v997_v26 = vld [vmem:[%s2164_s5 + $0x10] sm:$0xff] }
 0xb13   :  { %1014 = vmatpush.msrb.mxu2 %v997_v26  ;;  %1185 = vmatpush.msrb.mxu1 %v997_v26 }
 0xb14   :  { %752 = vrot.lane.b32.xlu1 %v750_v27, %s1702_s3  ;;  %v996_v27 = vld [vmem:[%s2164_s5 + $0x8] sm:$0xff] }
 0xb15   :  { %1015 = vmatpush.msrb.mxu2 %v996_v27  ;;  %1186 = vmatpush.msrb.mxu1 %v996_v27 }
 0xb58   :  { %v853_v29 = vpop.permute.xlu2 %852 }
 0xb59   :  { %1534 = vmatmul.msk.f32.vlgmr.msrb.gmra.mxu0 %vm80_vm6, %v853_v29  ;;  %1536 = vmatmul.msk.f32.vlgmr.msra.gmra.mxu1 %vm80_vm6, %v853_v29  ;;  %v995_v29 = vld [vmem:[%s2164_s5] sm:$0xff] }
 0xb5a   :  { %1016 = vmatpush.msrb.mxu2 %v995_v29  ;;  %1187 = vmatpush.msrb.mxu1 %v995_v29 }
 0xb86   :  { %v753_v31 = vpop.permute.xlu1 %752 }
 0xb87   :  { %755 = vst.msk [vmem:[#allocation2 + $0x6] sm:$0x3] %vm241_vm15, %v753_v31  ;;  %1533 = vmatmul.msk.f32.vlgmr.msra.gmra.mxu3 %vm80_vm6, %v753_v31 }
 0xb88   :  { %1281 = vmatpush.msra.mxu3 %v1097_v19 }
 0xb8a   :  { %1282 = vmatpush.msra.mxu3 %v1096_v20 }
 0xb8c   :  { %1283 = vmatpush.msra.mxu3 %v1095_v21  ;;  %v1165_v21 = vld [vmem:[%s2165_s4 + $0x18] sm:$0xff] }
 0xb8d   :  { %1210 = vmatpush.msra.mxu2 %v1165_v21  ;;  %1381 = vmatpush.msra.mxu1 %v1165_v21 }
 0xbd6   :  { %v944_v40 = vpop.f32.mrf.mxu1  ;;  %v873_v45 = vpop.f32.mrf.mxu0 }
 0xbd7   :  { %v948_v42 = vrot.slane %v944_v40, 6 }
 0xbd9   :  { %v950_v43 = vadd.f32 %v948_v42, %v1994_v48 }
 0xbdb   :  { %1640 = vtanh.f32 %v950_v43  ;;  %v1537_v33 = vmul.f32 -1.442695, %v950_v43 }
 0xbe1   :  { %v1641_v30 = vpop.eup %1640 }
 0xbe2   :  { %976 = vrot.lane.b32.xlu0 %v1641_v30, %s1701_s26 }
 0xc0a   :  { %v848_v47 = vpop.f32.mrf.mxu3 }
 0xc0b   :  { %v874_v46 = vadd.f32 %v873_v45, %v848_v47  ;;  %v1564_v45 = vld [vmem:[%s2166_s6] ss:$0 sm:$0xff] }
 0xc0d   :  { %v880_v28 = vadd.f32 %v1563_v44, %v874_v46 }
 0xc0f   :  { %1642 = vtanh.f32 %v880_v28  ;;  %v1535_v1 = vmul.f32 -1.442695, %v880_v28 }
 0xc10   :  { %1644 = vpow2.f32 %v1537_v33 }
 0xc15   :  { %v1643_v49 = vpop.eup %1642 }
 0xc16   :  { %903 = vrot.lane.b32.xlu1 %v1643_v49, %s1701_s26  ;;  %v1645_v34 = vpop.eup %1644 }
 0xc17   :  { %v954_v50 = vadd.f32 1.0, %v1645_v34 }
 0xc19   :  { %1646 = vrcp.f32 %v954_v50  ;;  %v966_v7 = vand.u32 2147483648, %v954_v50  ;;  %vm960_vm12 = vweird.f32 %v954_v50  ;;  %v964_v32 = vand.u32 2147483647, %v954_v50 }
 0xc1a   :  { %1648 = vpow2.f32 %v1535_v1 }
 0xc1b   :  { %v967_v52 = vor.u32 1.1754944e-38, %v966_v7  ;;  %vm965_vm14 = vcmp.eq.f32.partialorder %v964_v32, 8.507059e+37 }
 0xc1f   :  { %v1647_v41 = vpop.eup %1646 }
 0xc20   :  { %v956_v36 = vmul.f32 %v1647_v41, %v954_v50  ;;  %vm961_vm11 = vweird.f32 %v1647_v41  ;;  %v1649_v4 = vpop.eup %1648 }
 0xc21   :  { %vm962_vm13 = vmor %vm960_vm12, %vm961_vm11  ;;  %v884_v5 = vadd.f32 1.0, %v1649_v4 }
 0xc22   :  { %v957_v51 = vsub.f32 1.0, %v956_v36 }
 0xc23   :  { %1650 = vrcp.f32 %v884_v5  ;;  %v896_v58 = vand.u32 2147483648, %v884_v5  ;;  %vm890_vm1 = vweird.f32 %v884_v5  ;;  %v894_v59 = vand.u32 2147483647, %v884_v5 }
 0xc24   :  { %v958_v37 = vmul.f32 %v1647_v41, %v957_v51 }
 0xc25   :  { %v897_v61 = vor.u32 1.1754944e-38, %v896_v58  ;;  %vm895_vm3 = vcmp.eq.f32.partialorder %v894_v59, 8.507059e+37 }
 0xc26   :  { %v959_v38 = vadd.f32 %v1647_v41, %v958_v37 }
 0xc28   :  { %v963_v39 = vsel %vm962_vm13, %v1647_v41, %v959_v38 }
 0xc29   :  { %v968_v35 = vsel %vm965_vm14, %v967_v52, %v963_v39  ;;  %v1651_v9 = vpop.eup %1650 }
 0xc2a   :  { %v886_v54 = vmul.f32 %v1651_v9, %v884_v5  ;;  %vm891_vm0 = vweird.f32 %v1651_v9  ;;  %v974_v6 = vmul.f32 %v972_v3, %v968_v35 }
 0xc2b   :  { %vm892_vm2 = vmor %vm890_vm1, %vm891_vm0 }
 0xc2c   :  { %v887_v55 = vsub.f32 1.0, %v886_v54 }
 0xc2e   :  { %v888_v56 = vmul.f32 %v1651_v9, %v887_v55 }
 0xc30   :  { %v889_v57 = vadd.f32 %v1651_v9, %v888_v56 }
 0xc32   :  { %v893_v60 = vsel %vm892_vm2, %v1651_v9, %v889_v57 }
 0xc33   :  { %v898_v63 = vsel %vm895_vm3, %v897_v61, %v893_v60 }
 0xc34   :  { %v901_v12 = vmul.f32 %v898_v63, %v2010_v22  ;;  %v1094_v22 = vld [vmem:[%s2160_s2] sm:$0xff] }
 0xc35   :  { %1113 = vmatpush.msra.mxu0 %v1094_v22  ;;  %1284 = vmatpush.msra.mxu3 %v1094_v22  ;;  %v1163_v22 = vld [vmem:[%s2165_s4 + $0x8] sm:$0xff] }
 0xc37   :  { %1355 = vmatpush.msrb.mxu0 %v998_v25 }
 0xc39   :  { %1356 = vmatpush.msrb.mxu0 %v997_v26  ;;  %v1441_v26 = vld [vmem:[%s2167_s7 + $0x18] sm:$0xff] }
 0xc3b   :  { %1357 = vmatpush.msrb.mxu0 %v996_v27  ;;  %v1440_v27 = vld [vmem:[%s2167_s7 + $0x10] sm:$0xff] }
 0xc3d   :  { %1358 = vmatpush.msrb.mxu0 %v995_v29  ;;  %v1439_v29 = vld [vmem:[%s2167_s7 + $0x8] sm:$0xff] }
 0xc54   :  { %v977_v53 = vpop.permute.xlu0 %976 }
 0xc55   :  { %v979_v0 = vmul.f32 %v977_v53, %v968_v35 }
 0xc57   :  { %981 = vrot.lane.b32.xlu2 %v979_v0, %s1702_s3 }
 0xc88   :  { %v904_v62 = vpop.permute.xlu1 %903 }
 0xc89   :  { %v906_v2 = vmul.f32 %v904_v62, %v898_v63 }
 0xc8b   :  { %908 = vrot.lane.b32.xlu0 %v906_v2, %s1702_s3 }
 0xcb1   :  { %v982_v8 = vpop.permute.xlu2 %981 }
 0xcb2   :  { %v2029_v10 = vadd.f32 %v982_v8, %v974_v6 }
 0xcb4   :  { %1652 = vtanh.f32 %v2029_v10  ;;  %v1143_v6 = vrot.slane %v2029_v10, 6 }
 0xcba   :  { %v1653_v11 = vpop.eup %1652 }
 0xcbb   :  { %987 = vrot.lane.b32.xlu1 %v1653_v11, %s1701_s26 }
 0xcfd   :  { %v909_v13 = vpop.permute.xlu0 %908 }
 0xcfe   :  { %v2034_v14 = vadd.f32 %v909_v13, %v901_v12 }
 0xd00   :  { %1654 = vtanh.f32 %v2034_v14 }
 0xd06   :  { %v1655_v15 = vpop.eup %1654 }
 0xd07   :  { %914 = vrot.lane.b32.xlu2 %v1655_v15, %s1701_s26 }
 0xd2d   :  { %v988_v16 = vpop.permute.xlu1 %987 }
 0xd2e   :  { %v990_v17 = vmul.f32 %v988_v16, %v968_v35 }
 0xd30   :  { %v1022_v18 = vrot.slane %v990_v17, 2 }
 0xd32   :  { %1023 = vrot.lane.b32.xlu0 %v1022_v18, %s1702_s3 }
 0xd61   :  { %v915_v23 = vpop.permute.xlu2 %914 }
 0xd62   :  { %v917_v24 = vmul.f32 %v915_v23, %v898_v63  ;;  %v1162_v23 = vld [vmem:[%s2165_s4] sm:$0xff] }
 0xd64   :  { %919 = vrot.lane.b32.xlu1 %v917_v24, %s1702_s3 }
 0xda4   :  { %v1024_v31 = vpop.permute.xlu0 %1023 }
 0xda5   :  { %1539 = vmatmul.msk.f32.vlgmr.msrb.gmra.mxu3 %vm80_vm6, %v1024_v31  ;;  %1541 = vmatmul.msk.f32.vlgmr.msra.gmra.mxu0 %vm80_vm6, %v1024_v31  ;;  %v1438_v31 = vld [vmem:[%s2167_s7] sm:$0xff] }
 0xdd6   :  { %v920_v40 = vpop.permute.xlu1 %919 }
 0xdd7   :  { %922 = vst.msk [vmem:[#allocation2 + $0x8] sm:$0x3] %vm241_vm15, %v920_v40  ;;  %1538 = vmatmul.msk.f32.vlgmr.msrb.gmra.mxu2 %vm80_vm6, %v920_v40 }
 0xe22   :  { %v1115_v42 = vpop.f32.mrf.mxu0 }
 0xe23   :  { %v1119_v43 = vrot.slane %v1115_v42, 4  ;;  %v1436_v42 = vld [vmem:[#allocation2] sm:$0xff] }
 0xe25   :  { %v1121_v30 = vadd.f32 %v1119_v43, %v1994_v48 }
 0xe27   :  { %1656 = vtanh.f32 %v1121_v30  ;;  %v1542_v47 = vmul.f32 -1.442695, %v1121_v30 }
 0xe28   :  { %v1044_v46 = vpop.f32.mrf.mxu3 }
 0xe29   :  { %1658 = vpow2.f32 %v1542_v47 }
 0xe2d   :  { %v1657_v44 = vpop.eup %1656 }
 0xe2e   :  { %1147 = vrot.lane.b32.xlu2 %v1657_v44, %s1701_s26 }
 0xe2f   :  { %v1659_v34 = vpop.eup %1658 }
 0xe30   :  { %v1125_v41 = vadd.f32 1.0, %v1659_v34 }
 0xe32   :  { %v1137_v32 = vand.u32 2147483648, %v1125_v41  ;;  %vm1131_vm5 = vweird.f32 %v1125_v41  ;;  %v1135_v39 = vand.u32 2147483647, %v1125_v41 }
 0xe34   :  { %v1138_v53 = vor.u32 1.1754944e-38, %v1137_v32  ;;  %vm1136_vm8 = vcmp.eq.f32.partialorder %v1135_v39, 8.507059e+37 }
 0xe5a   :  { %v1018_v28 = vpop.f32.mrf.mxu2 }
 0xe5b   :  { %v1045_v49 = vadd.f32 %v1044_v46, %v1018_v28  ;;  %v1566_v46 = vld [vmem:[%s2166_s6] ss:$0 sm:$0xff] }
 0xe5d   :  { %v1051_v33 = vadd.f32 %v1564_v45, %v1045_v49 }
 0xe5f   :  { %1660 = vtanh.f32 %v1051_v33  ;;  %v1540_v4 = vmul.f32 -1.442695, %v1051_v33 }
 0xe60   :  { %1662 = vrcp.f32 %v1125_v41 }
 0xe61   :  { %1664 = vpow2.f32 %v1540_v4 }
 0xe65   :  { %v1661_v50 = vpop.eup %1660 }
 0xe66   :  { %1074 = vrot.lane.b32.xlu0 %v1661_v50, %s1701_s26  ;;  %v1663_v36 = vpop.eup %1662 }
 0xe67   :  { %v1127_v51 = vmul.f32 %v1663_v36, %v1125_v41  ;;  %vm1132_vm4 = vweird.f32 %v1663_v36  ;;  %v1665_v5 = vpop.eup %1664 }
 0xe68   :  { %vm1133_vm7 = vmor %vm1131_vm5, %vm1132_vm4  ;;  %v1055_v9 = vadd.f32 1.0, %v1665_v5 }
 0xe69   :  { %v1128_v37 = vsub.f32 1.0, %v1127_v51 }
 0xe6a   :  { %1666 = vrcp.f32 %v1055_v9  ;;  %v1067_v59 = vand.u32 2147483648, %v1055_v9  ;;  %vm1061_vm10 = vweird.f32 %v1055_v9  ;;  %v1065_v60 = vand.u32 2147483647, %v1055_v9 }
 0xe6b   :  { %v1129_v38 = vmul.f32 %v1663_v36, %v1128_v37 }
 0xe6c   :  { %v1068_v62 = vor.u32 1.1754944e-38, %v1067_v59  ;;  %vm1066_vm12 = vcmp.eq.f32.partialorder %v1065_v60, 8.507059e+37 }
 0xe6d   :  { %v1130_v7 = vadd.f32 %v1663_v36, %v1129_v38 }
 0xe6f   :  { %v1134_v52 = vsel %vm1133_vm7, %v1663_v36, %v1130_v7 }
 0xe70   :  { %v1139_v35 = vsel %vm1136_vm8, %v1138_v53, %v1134_v52  ;;  %v1667_v54 = vpop.eup %1666 }
 0xe71   :  { %v1057_v55 = vmul.f32 %v1667_v54, %v1055_v9  ;;  %vm1062_vm9 = vweird.f32 %v1667_v54  ;;  %v1145_v8 = vmul.f32 %v1143_v6, %v1139_v35 }
 0xe72   :  { %vm1063_vm11 = vmor %vm1061_vm10, %vm1062_vm9 }
 0xe73   :  { %v1058_v56 = vsub.f32 1.0, %v1057_v55 }
 0xe75   :  { %v1059_v57 = vmul.f32 %v1667_v54, %v1058_v56 }
 0xe77   :  { %v1060_v58 = vadd.f32 %v1667_v54, %v1059_v57 }
 0xe79   :  { %v1064_v61 = vsel %vm1063_vm11, %v1667_v54, %v1060_v58  ;;  %vm1503_vm11 = vcmask 130048  }
 0xe7a   :  { %v1069_v2 = vsel %vm1066_vm12, %v1068_v62, %v1064_v61 }
 0xe7b   :  { %v1072_v15 = vmul.f32 %v1069_v2, %v2034_v14  ;;  %v1164_v14 = vld [vmem:[%s2165_s4 + $0x10] sm:$0xff] }
 0xe7c   :  { %1211 = vmatpush.msra.mxu2 %v1164_v14  ;;  %1382 = vmatpush.msra.mxu1 %v1164_v14 }
 0xe7e   :  { %1212 = vmatpush.msra.mxu2 %v1163_v22  ;;  %1383 = vmatpush.msra.mxu1 %v1163_v22 }
 0xe80   :  { %1213 = vmatpush.msra.mxu2 %v1162_v23  ;;  %1384 = vmatpush.msra.mxu1 %v1162_v23 }
 0xe82   :  { %1464 = vmatpush.msrb.mxu2 %v1441_v26 }
 0xe84   :  { %1465 = vmatpush.msrb.mxu2 %v1440_v27 }
 0xe86   :  { %1466 = vmatpush.msrb.mxu2 %v1439_v29 }
 0xe88   :  { %v1148_v0 = vpop.permute.xlu2 %1147  ;;  %1467 = vmatpush.msrb.mxu2 %v1438_v31 }
 0xe89   :  { %v1150_v1 = vmul.f32 %v1148_v0, %v1139_v35 }
 0xe8b   :  { %1152 = vrot.lane.b32.xlu1 %v1150_v1, %s1702_s3 }
 0xed8   :  { %v1075_v63 = vpop.permute.xlu0 %1074 }
 0xed9   :  { %v1077_v3 = vmul.f32 %v1075_v63, %v1069_v2 }
 0xedb   :  { %1079 = vrot.lane.b32.xlu2 %v1077_v3, %s1702_s3 }
 0xefd   :  { %v1153_v11 = vpop.permute.xlu1 %1152 }
 0xefe   :  { %v2077_v12 = vadd.f32 %v1153_v11, %v1145_v8 }
 0xf00   :  { %1668 = vtanh.f32 %v2077_v12  ;;  %v1314_v8 = vrot.slane %v2077_v12, 6 }
 0xf06   :  { %v1669_v13 = vpop.eup %1668 }
 0xf07   :  { %1158 = vrot.lane.b32.xlu0 %v1669_v13, %s1701_s26 }
 0xf35   :  { %v1080_v16 = vpop.permute.xlu2 %1079 }
 0xf36   :  { %v2082_v17 = vadd.f32 %v1080_v16, %v1072_v15 }
 0xf38   :  { %1670 = vtanh.f32 %v2082_v17 }
 0xf3e   :  { %v1671_v18 = vpop.eup %1670 }
 0xf3f   :  { %1085 = vrot.lane.b32.xlu1 %v1671_v18, %s1701_s26 }
 0xf79   :  { %v1159_v10 = vpop.permute.xlu0 %1158 }
 0xf7a   :  { %v1161_v19 = vmul.f32 %v1159_v10, %v1139_v35 }
 0xf7c   :  { %v1193_v20 = vrot.slane %v1161_v19, 4 }
 0xf7e   :  { %1194 = vrot.lane.b32.xlu2 %v1193_v20, %s1702_s3 }
 0xfb1   :  { %v1086_v24 = vpop.permute.xlu1 %1085 }
 0xfb2   :  { %v1088_v25 = vmul.f32 %v1086_v24, %v1069_v2 }
 0xfb4   :  { %1090 = vrot.lane.b32.xlu0 %v1088_v25, %s1702_s3 }
 0xfd8   :  { %v1195_v40 = vpop.permute.xlu2 %1194 }
 0xfd9   :  { %1544 = vmatmul.msk.f32.vlgmr.msra.gmra.mxu2 %vm80_vm6, %v1195_v40  ;;  %1546 = vmatmul.msk.f32.vlgmr.msra.gmra.mxu3 %vm80_vm6, %v1195_v40 }
 0xfe1   :  { %1551 = vmatmul.msk.f32.vlgmr.msrb.gmra.mxu2 %vm80_vm6, %v1436_v42 }
0x1026   :  { %v1091_v43 = vpop.permute.xlu0 %1090 }
0x1027   :  { %1093 = vst.msk [vmem:[#allocation2 + $0xa] sm:$0x3] %vm241_vm15, %v1091_v43  ;;  %1543 = vmatmul.msk.f32.vlgmr.msrb.gmra.mxu1 %vm80_vm6, %v1091_v43 }
0x105c   :  { %v1286_v30 = vpop.f32.mrf.mxu3  ;;  %v1215_v28 = vpop.f32.mrf.mxu2 }
0x105d   :  { %v1290_v44 = vrot.slane %v1286_v30, 2 }
0x105f   :  { %v1292_v45 = vadd.f32 %v1290_v44, %v1994_v48 }
0x1061   :  { %1672 = vtanh.f32 %v1292_v45  ;;  %v1547_v50 = vmul.f32 -1.442695, %v1292_v45 }
0x1067   :  { %v1673_v47 = vpop.eup %1672 }
0x1068   :  { %1318 = vrot.lane.b32.xlu1 %v1673_v47, %s1701_s26 }
0x10a4   :  { %v1189_v49 = vpop.f32.mrf.mxu1 }
0x10a5   :  { %v1216_v33 = vadd.f32 %v1215_v28, %v1189_v49 }
0x10a7   :  { %v1222_v34 = vadd.f32 %v1566_v46, %v1216_v33 }
0x10a9   :  { %1674 = vtanh.f32 %v1222_v34  ;;  %v1545_v5 = vmul.f32 -1.442695, %v1222_v34 }
0x10aa   :  { %1676 = vpow2.f32 %v1547_v50 }
0x10af   :  { %v1675_v41 = vpop.eup %1674 }
0x10b0   :  { %1245 = vrot.lane.b32.xlu2 %v1675_v41, %s1701_s26  ;;  %v1677_v36 = vpop.eup %1676 }
0x10b1   :  { %v1296_v48 = vadd.f32 1.0, %v1677_v36 }
0x10b3   :  { %1678 = vrcp.f32 %v1296_v48  ;;  %v1308_v39 = vand.u32 2147483648, %v1296_v48  ;;  %vm1302_vm14 = vweird.f32 %v1296_v48  ;;  %v1306_v52 = vand.u32 2147483647, %v1296_v48 }
0x10b4   :  { %1680 = vpow2.f32 %v1545_v5 }
0x10b5   :  { %v1309_v35 = vor.u32 1.1754944e-38, %v1308_v39  ;;  %vm1307_vm1 = vcmp.eq.f32.partialorder %v1306_v52, 8.507059e+37  ;;  %v1565_v39 = vld [vmem:[%s2168_s8] ss:$0 sm:$0xff]  ;;  %v1469_v52 = vpop.f32.mrf.mxu2 }
0x10b9   :  { %v1679_v51 = vpop.eup %1678 }
0x10ba   :  { %v1298_v37 = vmul.f32 %v1679_v51, %v1296_v48  ;;  %vm1303_vm13 = vweird.f32 %v1679_v51  ;;  %v1681_v9 = vpop.eup %1680 }
0x10bb   :  { %vm1304_vm0 = vmor %vm1302_vm14, %vm1303_vm13  ;;  %v1226_v54 = vadd.f32 1.0, %v1681_v9 }
0x10bc   :  { %v1299_v38 = vsub.f32 1.0, %v1298_v37 }
0x10bd   :  { %1682 = vrcp.f32 %v1226_v54  ;;  %v1238_v60 = vand.u32 2147483648, %v1226_v54  ;;  %vm1232_vm3 = vweird.f32 %v1226_v54  ;;  %v1236_v61 = vand.u32 2147483647, %v1226_v54 }
0x10be   :  { %v1300_v7 = vmul.f32 %v1679_v51, %v1299_v38 }
0x10bf   :  { %v1239_v63 = vor.u32 1.1754944e-38, %v1238_v60  ;;  %vm1237_vm5 = vcmp.eq.f32.partialorder %v1236_v61, 8.507059e+37 }
0x10c0   :  { %v1301_v32 = vadd.f32 %v1679_v51, %v1300_v7 }
0x10c2   :  { %v1305_v53 = vsel %vm1304_vm0, %v1679_v51, %v1301_v32  ;;  %v1481_v51 = vld [vmem:[%s2169_s9] sm:$0xff] }
0x10c3   :  { %v1310_v1 = vsel %vm1307_vm1, %v1309_v35, %v1305_v53  ;;  %v1683_v55 = vpop.eup %1682  ;;  %v1470_v53 = vadd.f32 %v1565_v39, %v1469_v52 }
0x10c4   :  { %v1228_v56 = vmul.f32 %v1683_v55, %v1226_v54  ;;  %vm1233_vm2 = vweird.f32 %v1683_v55  ;;  %v1316_v11 = vmul.f32 %v1314_v8, %v1310_v1 }
0x10c5   :  { %vm1234_vm4 = vmor %vm1232_vm3, %vm1233_vm2  ;;  %v1475_v35 = vmul.f32 0.5, %v1470_v53 }
0x10c6   :  { %v1229_v57 = vsub.f32 1.0, %v1228_v56 }
0x10c8   :  { %v1230_v58 = vmul.f32 %v1683_v55, %v1229_v57 }
0x10ca   :  { %v1231_v59 = vadd.f32 %v1683_v55, %v1230_v58 }
0x10cc   :  { %v1235_v62 = vsel %vm1234_vm4, %v1683_v55, %v1231_v59  ;;  %v1482_v55 = vld [vmem:[%s2169_s9 + $0x8] sm:$0xff] }
0x10cd   :  { %v1240_v3 = vsel %vm1237_vm5, %v1239_v63, %v1235_v62 }
0x10ce   :  { %v1243_v18 = vmul.f32 %v1240_v3, %v2082_v17  ;;  %v1567_v17 = vld [vmem:[%s2166_s6] ss:$0 sm:$0xff] }
0x10da   :  { %v1319_v0 = vpop.permute.xlu1 %1318 }
0x10db   :  { %v1321_v4 = vmul.f32 %v1319_v0, %v1310_v1  ;;  %v1477_v0 = vmul.f32 1.442695, %v1475_v35 }
0x10dd   :  { %1323 = vrot.lane.b32.xlu0 %v1321_v4, %s1702_s3 }
0x110a   :  { %v1246_v2 = vpop.permute.xlu2 %1245 }
0x110b   :  { %v1248_v6 = vmul.f32 %v1246_v2, %v1240_v3 }
0x110d   :  { %1250 = vrot.lane.b32.xlu1 %v1248_v6, %s1702_s3 }
0x114f   :  { %v1324_v13 = vpop.permute.xlu0 %1323 }
0x1150   :  { %v1326_v15 = vadd.f32 %v1324_v13, %v1316_v11 }
0x1152   :  { %1684 = vtanh.f32 %v1326_v15 }
0x1158   :  { %v1685_v16 = vpop.eup %1684 }
0x1159   :  { %1329 = vrot.lane.b32.xlu2 %v1685_v16, %s1701_s26 }
0x117f   :  { %v1251_v10 = vpop.permute.xlu1 %1250 }
0x1180   :  { %v1253_v19 = vadd.f32 %v1251_v10, %v1243_v18 }
0x1182   :  { %1686 = vtanh.f32 %v1253_v19 }
0x1188   :  { %v1687_v20 = vpop.eup %1686 }
0x1189   :  { %1256 = vrot.lane.b32.xlu0 %v1687_v20, %s1701_s26 }
0x11b3   :  { %v1330_v21 = vpop.permute.xlu2 %1329 }
0x11b4   :  { %v1332_v14 = vmul.f32 %v1330_v21, %v1310_v1 }
0x11b6   :  { %v1364_v22 = vrot.slane %v1332_v14, 6 }
0x11b8   :  { %1365 = vrot.lane.b32.xlu2 %v1364_v22, %s1702_s3 }
0x11fb   :  { %v1257_v12 = vpop.permute.xlu0 %1256 }
0x11fc   :  { %v1259_v23 = vmul.f32 %v1257_v12, %v1240_v3 }
0x11fe   :  { %1261 = vrot.lane.b32.xlu1 %v1259_v23, %s1702_s3 }
0x1212   :  { %v1366_v24 = vpop.permute.xlu2 %1365 }
0x1213   :  { %1549 = vmatmul.msk.f32.vlgmr.msra.gmra.mxu1 %vm80_vm6, %v1366_v24 }
0x1270   :  { %v1262_v25 = vpop.permute.xlu1 %1261 }
0x1271   :  { %1264 = vst.msk [vmem:[#allocation2 + $0xc] sm:$0x3] %vm241_vm15, %v1262_v25  ;;  %1548 = vmatmul.msk.f32.vlgmr.msrb.gmra.mxu0 %vm80_vm6, %v1262_v25 }
0x1290   :  { %v1386_v26 = vpop.f32.mrf.mxu1 }
0x12ee   :  { %v1360_v27 = vpop.f32.mrf.mxu0 }
0x12ef   :  { %v1387_v29 = vadd.f32 %v1386_v26, %v1360_v27 }
0x12f1   :  { %v1393_v31 = vadd.f32 %v1567_v17, %v1387_v29 }
0x12f3   :  { %1688 = vtanh.f32 %v1393_v31  ;;  %v1550_v42 = vmul.f32 -1.442695, %v1393_v31 }
0x12f5   :  { %1690 = vpow2.f32 %v1550_v42 }
0x12f9   :  { %v1689_v40 = vpop.eup %1688 }
0x12fa   :  { %1416 = vrot.lane.b32.xlu0 %v1689_v40, %s1701_s26 }
0x12fb   :  { %v1691_v43 = vpop.eup %1690 }
0x12fc   :  { %v1397_v30 = vadd.f32 1.0, %v1691_v43 }
0x12fe   :  { %1692 = vrcp.f32 %v1397_v30  ;;  %v1409_v49 = vand.u32 2147483648, %v1397_v30  ;;  %vm1403_vm8 = vweird.f32 %v1397_v30  ;;  %v1407_v33 = vand.u32 2147483647, %v1397_v30 }
0x1300   :  { %v1410_v50 = vor.u32 1.1754944e-38, %v1409_v49  ;;  %vm1408_vm10 = vcmp.eq.f32.partialorder %v1407_v33, 8.507059e+37 }
0x1304   :  { %v1693_v44 = vpop.eup %1692 }
0x1305   :  { %v1399_v45 = vmul.f32 %v1693_v44, %v1397_v30  ;;  %vm1404_vm7 = vweird.f32 %v1693_v44 }
0x1306   :  { %vm1405_vm9 = vmor %vm1403_vm8, %vm1404_vm7 }
0x1307   :  { %v1400_v47 = vsub.f32 1.0, %v1399_v45 }
0x1309   :  { %v1401_v46 = vmul.f32 %v1693_v44, %v1400_v47 }
0x130b   :  { %v1402_v28 = vadd.f32 %v1693_v44, %v1401_v46 }
0x130d   :  { %v1406_v34 = vsel %vm1405_vm9, %v1693_v44, %v1402_v28 }
0x130e   :  { %v1411_v36 = vsel %vm1408_vm10, %v1410_v50, %v1406_v34 }
0x130f   :  { %v1414_v37 = vmul.f32 %v1411_v36, %v1253_v19 }
0x136c   :  { %v1417_v41 = vpop.permute.xlu0 %1416 }
0x136d   :  { %v1419_v48 = vmul.f32 %v1417_v41, %v1411_v36 }
0x136f   :  { %1421 = vrot.lane.b32.xlu1 %v1419_v48, %s1702_s3 }
0x1377   :  { %1485 = vrot.lane.b32.xlu1 %v1481_v51, %s1703_s0 }
0x13e1   :  { %v1422_v38 = vpop.permute.xlu1 %1421 }
0x13e2   :  { %v1424_v7 = vadd.f32 %v1422_v38, %v1414_v37 }
0x13e4   :  { %1694 = vtanh.f32 %v1424_v7 }
0x13e5   :  { %1696 = vpow2.f32 %v1477_v0 }
0x13e9   :  { %v1486_v5 = vpop.permute.xlu1 %1485 }
0x13ea   :  { %v1695_v32 = vpop.eup %1694 }
0x13eb   :  { %1427 = vrot.lane.b32.xlu2 %v1695_v32, %s1701_s26  ;;  %v1697_v9 = vpop.eup %1696 }
0x13ec   :  { %v1491_v54 = vmul.f32 %v1697_v9, %v1486_v5 }
0x13f3   :  { %1487 = vrot.lane.b32.xlu2 %v1482_v55, %s1703_s0 }
0x1445   :  { %v1428_v1 = vpop.permute.xlu2 %1427 }
0x1446   :  { %v1430_v4 = vmul.f32 %v1428_v1, %v1411_v36 }
0x1448   :  { %1432 = vrot.lane.b32.xlu0 %v1430_v4, %s1702_s3 }
0x144d   :  { %v1488_v2 = vpop.permute.xlu2 %1487 }
0x1450   :  { %1495 = vrot.lane.b32.xlu0 %v1491_v54, %s1704_s28 }
0x14ba   :  { %v1433_v56 = vpop.permute.xlu0 %1432 }
0x14bb   :  { %1435 = vst.msk [vmem:[#allocation2 + $0xe] sm:$0x3] %vm241_vm15, %v1433_v56 }
0x14c2   :  { %v1496_v57 = vpop.permute.xlu0 %1495  ;;  %v1437_v58 = vld [vmem:[#allocation2 + $0x8] sm:$0xff] }
0x14c3   :  { %v1501_v59 = vadd.f32 %v1496_v57, %v1470_v53  ;;  %1552 = vmatmul.msk.f32.gmra.mxu2 %vm80_vm6, %v1437_v58 }
0x14c5   :  { %1504 = vst.msk [vmem:[%s2170_s10] sm:$0xff] %vm1503_vm11, %v1501_v59 }
0x1546   :  { %v1472_v60 = vpop.f32.mrf.mxu2 }
0x1547   :  { %v1473_v61 = vadd.f32 %v1565_v39, %v1472_v60 }
0x1549   :  { %v1476_v62 = vmul.f32 0.5, %v1473_v61 }
0x154b   :  { %v1479_v63 = vmul.f32 1.442695, %v1476_v62 }
0x154d   :  { %1698 = vpow2.f32 %v1479_v63 }
0x1553   :  { %v1699_v3 = vpop.eup %1698 }
0x1554   :  { %v1492_v6 = vmul.f32 %v1699_v3, %v1488_v2 }
0x1556   :  { %1497 = vrot.lane.b32.xlu1 %v1492_v6, %s1704_s28 }
0x15c8   :  { %v1498_v8 = vpop.permute.xlu1 %1497 }
0x15c9   :  { %v1502_v11 = vadd.f32 %v1498_v8, %v1473_v61 }
0x15cb   :  { %1505 = vst.msk [vmem:[%s2170_s10 + $0x8] sm:$0xff] %vm1503_vm11, %v1502_v11 }

</bundles_post_ra>
